<compile_context>
chip_gen: v6e
topology: v6e:2x2x1
jax: 0.10.0
libtpu: 0.0.40
codegen_flags: <defaults>
</compile_context>

<pallas_src>
import functools

import jax
import jax.numpy as jnp
from jax.experimental import pallas as pl
from jax.experimental.pallas import tpu as pltpu

# Padded ("hardware") dimensions.
D_PAD = 128    # input/output feature dim (38 -> 128)
H_PAD = 512    # refinement hidden dim (500 -> 512)
HH_PAD = 256   # selection hidden dim (250 -> 256)
HF_PAD = H_PAD + HH_PAD  # fused first-stage output dim (768)


def _round_up(x, m):
    return ((x + m - 1) // m) * m


def adaptive_mlp_kernel(
    x_ref,                 # (TM, D_PAD)  f32
    w14_ref, b14_ref,      # fused [refine L1 | select L1]: (D_PAD, HF_PAD) bf16, (1, HF_PAD) f32
    w2_ref, b2_ref,        # refinement layer 2: (H_PAD, H_PAD) bf16, (1, H_PAD) f32
    w3_ref, b3_ref,        # refinement layer 3: (H_PAD, D_PAD) bf16, (1, D_PAD) f32
    w5_ref, b5_ref,        # selection layer 2:  (HH_PAD, D_PAD) bf16, (1, D_PAD) f32
    out_ref, sel_ref,      # (TM, D_PAD) f32 each
):
    x = x_ref[...]                                   # f32 activations
    xb = x.astype(jnp.bfloat16)

    # Fused first stage: [refinement L1 | selection L1] in one MXU pass.
    h14 = jnp.dot(xb, w14_ref[...], preferred_element_type=jnp.float32)
    h14 = jnp.maximum(h14 + b14_ref[...], 0.0)       # ReLU (both branches use ReLU here)
    h1 = h14[:, :H_PAD]                              # refinement hidden (TM, 512)
    s1 = h14[:, H_PAD:]                              # selection hidden  (TM, 256)

    # Refinement net: Linear -> ReLU -> Linear.
    h2 = jnp.dot(h1.astype(jnp.bfloat16), w2_ref[...],
                 preferred_element_type=jnp.float32) + b2_ref[...]
    h2 = jnp.maximum(h2, 0.0)
    refinement = jnp.dot(h2.astype(jnp.bfloat16), w3_ref[...],
                         preferred_element_type=jnp.float32) + b3_ref[...]
    mlp_predictions = refinement + 0.1 * x

    # Selection net tail: Linear -> Sigmoid.
    sel_logits = jnp.dot(s1.astype(jnp.bfloat16), w5_ref[...],
                         preferred_element_type=jnp.float32) + b5_ref[...]
    selection_weights = jax.nn.sigmoid(sel_logits)

    out_ref[...] = (1.0 - selection_weights) * x + selection_weights * mlp_predictions
    sel_ref[...] = selection_weights


def pack_params(params):
    """Zero-pad unpadded f32 params to hardware dims; weights -> bf16, biases -> f32."""
    def pad_w(w, rows, cols):
        wp = jnp.zeros((rows, cols), jnp.float32).at[: w.shape[0], : w.shape[1]].set(w)
        return wp.astype(jnp.bfloat16)

    def pad_b(b, cols):
        return jnp.zeros((1, cols), jnp.float32).at[:, : b.shape[1]].set(b)

    # Fuse the two x-consuming layers along the output axis.
    w14 = jnp.concatenate(
        [pad_w(params["w1"], D_PAD, H_PAD), pad_w(params["w4"], D_PAD, HH_PAD)], axis=1)
    b14 = jnp.concatenate([pad_b(params["b1"], H_PAD), pad_b(params["b4"], HH_PAD)], axis=1)
    return {
        "w14": w14, "b14": b14,
        "w2": pad_w(params["w2"], H_PAD, H_PAD), "b2": pad_b(params["b2"], H_PAD),
        "w3": pad_w(params["w3"], H_PAD, D_PAD), "b3": pad_b(params["b3"], D_PAD),
        "w5": pad_w(params["w5"], HH_PAD, D_PAD), "b5": pad_b(params["b5"], D_PAD),
    }


@functools.partial(jax.jit, static_argnames=("input_dim", "output_dim", "tm"))
def adaptive_mlp_forward(x, pp, *, input_dim=38, output_dim=38, tm=128):
    """x: (B, input_dim) float32.  pp: packed/padded params (see pack_params)."""
    B = x.shape[0]
    tm = min(tm, max(8, _round_up(B, 8)))      # small batches: shrink the tile
    b_pad = _round_up(B, tm)

    # Zero-pad batch and feature dims (zero rows/cols are inert through the net).
    x_p = jnp.zeros((b_pad, D_PAD), jnp.float32).at[:B, :input_dim].set(x)

    grid = (b_pad // tm,)
    const = lambda i: (0, 0)                   # weights/biases: VMEM-resident
    tile = lambda i: (i, 0)                    # activations: tiled over batch

    weight_bytes = sum(int(pp[k].size) * pp[k].dtype.itemsize for k in pp)
    cost = pl.CostEstimate(
        flops=2 * b_pad * (D_PAD * HF_PAD + H_PAD * H_PAD + H_PAD * D_PAD + HH_PAD * D_PAD),
        transcendentals=b_pad * D_PAD,
        bytes_accessed=weight_bytes + 3 * b_pad * D_PAD * 4,
    )

    out_p, sel_p = pl.pallas_call(
        adaptive_mlp_kernel,
        out_shape=(
            jax.ShapeDtypeStruct((b_pad, D_PAD), jnp.float32),
            jax.ShapeDtypeStruct((b_pad, D_PAD), jnp.float32),
        ),
        grid=grid,
        in_specs=[
            pl.BlockSpec((tm, D_PAD), tile),          # x
            pl.BlockSpec((D_PAD, HF_PAD), const),     # w14
            pl.BlockSpec((1, HF_PAD), const),         # b14
            pl.BlockSpec((H_PAD, H_PAD), const),      # w2
            pl.BlockSpec((1, H_PAD), const),          # b2
            pl.BlockSpec((H_PAD, D_PAD), const),      # w3
            pl.BlockSpec((1, D_PAD), const),          # b3
            pl.BlockSpec((HH_PAD, D_PAD), const),     # w5
            pl.BlockSpec((1, D_PAD), const),          # b5
        ],
        out_specs=(
            pl.BlockSpec((tm, D_PAD), tile),
            pl.BlockSpec((tm, D_PAD), tile),
        ),
        compiler_params=pltpu.CompilerParams(dimension_semantics=("parallel",)),
        cost_estimate=cost,
    )(x_p, pp["w14"], pp["b14"], pp["w2"], pp["b2"], pp["w3"], pp["b3"], pp["w5"], pp["b5"])

    return out_p[:B, :output_dim], sel_p[:B, :output_dim]


def init_params(key, input_dim=38, hidden_dim=500, output_dim=38):
    """PyTorch-style nn.Linear init (uniform +-1/sqrt(fan_in)); weights stored (in, out)."""
    def linear(k, fan_in, fan_out):
        kw, kb = jax.random.split(k)
        bound = 1.0 / jnp.sqrt(jnp.float32(fan_in))
        w = jax.random.uniform(kw, (fan_in, fan_out), jnp.float32, -bound, bound)
        b = jax.random.uniform(kb, (1, fan_out), jnp.float32, -bound, bound)
        return w, b

    keys = jax.random.split(key, 5)
    w1, b1 = linear(keys[0], input_dim, hidden_dim)
    w2, b2 = linear(keys[1], hidden_dim, hidden_dim)
    w3, b3 = linear(keys[2], hidden_dim, output_dim)
    w4, b4 = linear(keys[3], input_dim, hidden_dim // 2)
    w5, b5 = linear(keys[4], hidden_dim // 2, output_dim)
    return {
        "w1": w1, "b1": b1, "w2": w2, "b2": b2, "w3": w3, "b3": b3,
        "w4": w4, "b4": b4, "w5": w5, "b5": b5,
    }


def reference_forward(x, p):
    """Pure-JAX reference of the PyTorch forward (eval mode), f32 math."""
    h = jnp.maximum(x @ p["w1"] + p["b1"], 0.0)
    h = jnp.maximum(h @ p["w2"] + p["b2"], 0.0)
    refinement = h @ p["w3"] + p["b3"]
    mlp_predictions = refinement + 0.1 * x
    s = jnp.maximum(x @ p["w4"] + p["b4"], 0.0)
    sel = jax.nn.sigmoid(s @ p["w5"] + p["b5"])
    return (1.0 - sel) * x + sel * mlp_predictions, sel


if __name__ == "__main__":
    key = jax.random.PRNGKey(0)
    k_param, k_x = jax.random.split(key)

    input_dim, hidden_dim, output_dim = 38, 500, 38
    batch = 200  # exercises batch tiling (tm=128 -> grid of 2) and batch padding

    params = init_params(k_param, input_dim, hidden_dim, output_dim)
    x = jax.random.normal(k_x, (batch, input_dim), jnp.float32)

    packed = pack_params(params)
    out, sel = adaptive_mlp_forward(x, packed, input_dim=input_dim, output_dim=output_dim)
    out, sel = jax.block_until_ready((out, sel))

    # Reference uses the same bf16-quantized weights (that's what the model stores),
    # upcast to f32; biases are f32 in both.  Tolerance covers the in-kernel bf16
    # activation casts feeding the MXU.
    params_q = {
        k: (v.astype(jnp.bfloat16).astype(jnp.float32) if k.startswith("w") else v)
        for k, v in params.items()
    }
    ref_out, ref_sel = reference_forward(x, params_q)

    assert out.shape == (batch, output_dim)
    assert sel.shape == (batch, output_dim)
    assert jnp.allclose(out, ref_out, atol=3e-2, rtol=3e-2), float(jnp.max(jnp.abs(out - ref_out)))
    assert jnp.allclose(sel, ref_sel, atol=3e-2, rtol=3e-2), float(jnp.max(jnp.abs(sel - ref_sel)))

    print("KERNEL_OK")
</pallas_src>

<mosaic_0001>
module attributes {stable_mosaic.version = 11 : i64} {
  func.func @adaptive_mlp_kernel(%arg0: i32, %arg1: memref<128x128xf32, #tpu.memory_space<vmem>>, %arg2: memref<128x768xbf16, #tpu.memory_space<vmem>>, %arg3: memref<1x768xf32, #tpu.memory_space<vmem>>, %arg4: memref<512x512xbf16, #tpu.memory_space<vmem>>, %arg5: memref<1x512xf32, #tpu.memory_space<vmem>>, %arg6: memref<512x128xbf16, #tpu.memory_space<vmem>>, %arg7: memref<1x128xf32, #tpu.memory_space<vmem>>, %arg8: memref<256x128xbf16, #tpu.memory_space<vmem>>, %arg9: memref<1x128xf32, #tpu.memory_space<vmem>>, %arg10: memref<128x128xf32, #tpu.memory_space<vmem>>, %arg11: memref<128x128xf32, #tpu.memory_space<vmem>>) attributes {dimension_semantics = [#tpu.dimension_semantics<parallel>], iteration_bounds = array<i64: 2>, scalar_prefetch = 0 : i64, scratch_operands = 0 : i64, tpu.core_type = #tpu.core_type<tc>, window_params = [{transform_indices = @transform_0, window_bounds = array<i64: 128, 128>}, {pipeline_mode = #tpu.pipeline_mode<synchronous>, transform_indices = @transform_1, window_bounds = array<i64: 128, 768>}, {pipeline_mode = #tpu.pipeline_mode<synchronous>, transform_indices = @transform_2, window_bounds = array<i64: 1, 768>}, {pipeline_mode = #tpu.pipeline_mode<synchronous>, transform_indices = @transform_3, window_bounds = array<i64: 512, 512>}, {pipeline_mode = #tpu.pipeline_mode<synchronous>, transform_indices = @transform_4, window_bounds = array<i64: 1, 512>}, {pipeline_mode = #tpu.pipeline_mode<synchronous>, transform_indices = @transform_5, window_bounds = array<i64: 512, 128>}, {pipeline_mode = #tpu.pipeline_mode<synchronous>, transform_indices = @transform_6, window_bounds = array<i64: 1, 128>}, {pipeline_mode = #tpu.pipeline_mode<synchronous>, transform_indices = @transform_7, window_bounds = array<i64: 256, 128>}, {pipeline_mode = #tpu.pipeline_mode<synchronous>, transform_indices = @transform_8, window_bounds = array<i64: 1, 128>}, {transform_indices = @transform_9, window_bounds = array<i64: 128, 128>}, {transform_indices = @transform_10, window_bounds = array<i64: 128, 128>}]} {
    %c0 = arith.constant 0 : index
    %c0_0 = arith.constant 0 : index
    %0 = vector.load %arg1[%c0, %c0_0] : memref<128x128xf32, #tpu.memory_space<vmem>>, vector<128x128xf32>
    %1 = arith.truncf %0 : vector<128x128xf32> to vector<128x128xbf16>
    %c0_1 = arith.constant 0 : index
    %c0_2 = arith.constant 0 : index
    %2 = vector.load %arg2[%c0_1, %c0_2] : memref<128x768xbf16, #tpu.memory_space<vmem>>, vector<128x768xbf16>
    %cst = arith.constant dense<0.000000e+00> : vector<128x768xf32>
    %3 = tpu.matmul %1, %2, %cst {dimension_numbers = #tpu.dot_dimension_numbers<[1], [0], [0], [1], [0, 0, 1, 1], [], []>} : vector<128x128xbf16>, vector<128x768xbf16>, vector<128x768xf32> -> vector<128x768xf32>
    %c0_3 = arith.constant 0 : index
    %c0_4 = arith.constant 0 : index
    %4 = vector.load %arg3[%c0_3, %c0_4] : memref<1x768xf32, #tpu.memory_space<vmem>>, vector<1x768xf32>
    %5 = vector.broadcast %4 : vector<1x768xf32> to vector<128x768xf32>
    %6 = arith.addf %3, %5 : vector<128x768xf32>
    %cst_5 = arith.constant 0.000000e+00 : f32
    %7 = vector.broadcast %cst_5 : f32 to vector<128x768xf32>
    %8 = arith.maximumf %6, %7 : vector<128x768xf32>
    %9 = vector.extract_strided_slice %8 {offsets = [0, 0], sizes = [128, 512], strides = [1, 1]} : vector<128x768xf32> to vector<128x512xf32>
    %10 = vector.extract_strided_slice %8 {offsets = [0, 512], sizes = [128, 256], strides = [1, 1]} : vector<128x768xf32> to vector<128x256xf32>
    %11 = arith.truncf %9 : vector<128x512xf32> to vector<128x512xbf16>
    %c0_6 = arith.constant 0 : index
    %c0_7 = arith.constant 0 : index
    %12 = vector.load %arg4[%c0_6, %c0_7] : memref<512x512xbf16, #tpu.memory_space<vmem>>, vector<512x512xbf16>
    %cst_8 = arith.constant dense<0.000000e+00> : vector<128x512xf32>
    %13 = tpu.matmul %11, %12, %cst_8 {dimension_numbers = #tpu.dot_dimension_numbers<[1], [0], [0], [1], [0, 0, 1, 1], [], []>} : vector<128x512xbf16>, vector<512x512xbf16>, vector<128x512xf32> -> vector<128x512xf32>
    %c0_9 = arith.constant 0 : index
    %c0_10 = arith.constant 0 : index
    %14 = vector.load %arg5[%c0_9, %c0_10] : memref<1x512xf32, #tpu.memory_space<vmem>>, vector<1x512xf32>
    %15 = vector.broadcast %14 : vector<1x512xf32> to vector<128x512xf32>
    %16 = arith.addf %13, %15 : vector<128x512xf32>
    %cst_11 = arith.constant 0.000000e+00 : f32
    %17 = vector.broadcast %cst_11 : f32 to vector<128x512xf32>
    %18 = arith.maximumf %16, %17 : vector<128x512xf32>
    %19 = arith.truncf %18 : vector<128x512xf32> to vector<128x512xbf16>
    %c0_12 = arith.constant 0 : index
    %c0_13 = arith.constant 0 : index
    %20 = vector.load %arg6[%c0_12, %c0_13] : memref<512x128xbf16, #tpu.memory_space<vmem>>, vector<512x128xbf16>
    %cst_14 = arith.constant dense<0.000000e+00> : vector<128x128xf32>
    %21 = tpu.matmul %19, %20, %cst_14 {dimension_numbers = #tpu.dot_dimension_numbers<[1], [0], [0], [1], [0, 0, 1, 1], [], []>} : vector<128x512xbf16>, vector<512x128xbf16>, vector<128x128xf32> -> vector<128x128xf32>
    %c0_15 = arith.constant 0 : index
    %c0_16 = arith.constant 0 : index
    %22 = vector.load %arg7[%c0_15, %c0_16] : memref<1x128xf32, #tpu.memory_space<vmem>>, vector<1x128xf32>
    %23 = vector.broadcast %22 : vector<1x128xf32> to vector<128x128xf32>
    %24 = arith.addf %21, %23 : vector<128x128xf32>
    %cst_17 = arith.constant 1.000000e-01 : f32
    %25 = vector.broadcast %cst_17 : f32 to vector<128x128xf32>
    %26 = arith.mulf %25, %0 : vector<128x128xf32>
    %27 = arith.addf %24, %26 : vector<128x128xf32>
    %28 = arith.truncf %10 : vector<128x256xf32> to vector<128x256xbf16>
    %c0_18 = arith.constant 0 : index
    %c0_19 = arith.constant 0 : index
    %29 = vector.load %arg8[%c0_18, %c0_19] : memref<256x128xbf16, #tpu.memory_space<vmem>>, vector<256x128xbf16>
    %cst_20 = arith.constant dense<0.000000e+00> : vector<128x128xf32>
    %30 = tpu.matmul %28, %29, %cst_20 {dimension_numbers = #tpu.dot_dimension_numbers<[1], [0], [0], [1], [0, 0, 1, 1], [], []>} : vector<128x256xbf16>, vector<256x128xbf16>, vector<128x128xf32> -> vector<128x128xf32>
    %c0_21 = arith.constant 0 : index
    %c0_22 = arith.constant 0 : index
    %31 = vector.load %arg9[%c0_21, %c0_22] : memref<1x128xf32, #tpu.memory_space<vmem>>, vector<1x128xf32>
    %32 = vector.broadcast %31 : vector<1x128xf32> to vector<128x128xf32>
    %33 = arith.addf %30, %32 : vector<128x128xf32>
    %34 = arith.negf %33 : vector<128x128xf32>
    %35 = math.exp %34 : vector<128x128xf32>
    %cst_23 = arith.constant 1.000000e+00 : f32
    %36 = vector.broadcast %cst_23 : f32 to vector<128x128xf32>
    %37 = arith.addf %36, %35 : vector<128x128xf32>
    %38 = arith.divf %36, %37 : vector<128x128xf32>
    %cst_24 = arith.constant 1.000000e+00 : f32
    %39 = vector.broadcast %cst_24 : f32 to vector<128x128xf32>
    %40 = arith.subf %39, %38 : vector<128x128xf32>
    %41 = arith.mulf %40, %0 : vector<128x128xf32>
    %42 = arith.mulf %38, %27 : vector<128x128xf32>
    %43 = arith.addf %41, %42 : vector<128x128xf32>
    %c0_25 = arith.constant 0 : index
    %c0_26 = arith.constant 0 : index
    %44 = vector.load %arg10[%c0_25, %c0_26] : memref<128x128xf32, #tpu.memory_space<vmem>>, vector<128x128xf32>
    tpu.vector_store %arg10[%c0_25, %c0_26], %43 {strides = array<i32>} : memref<128x128xf32, #tpu.memory_space<vmem>>, vector<128x128xf32>,
    %c0_27 = arith.constant 0 : index
    %c0_28 = arith.constant 0 : index
    %45 = vector.load %arg11[%c0_27, %c0_28] : memref<128x128xf32, #tpu.memory_space<vmem>>, vector<128x128xf32>
    tpu.vector_store %arg11[%c0_27, %c0_28], %38 {strides = array<i32>} : memref<128x128xf32, #tpu.memory_space<vmem>>, vector<128x128xf32>,
    return
  }
  func.func @transform_0(%arg0: i32) -> (i32, i32) {
    %c0_i32 = arith.constant 0 : i32
    %c0_i32_0 = arith.constant 0 : i32
    return %arg0, %c0_i32 : i32, i32
  }
  func.func @transform_1(%arg0: i32) -> (i32, i32) {
    %c0_i32 = arith.constant 0 : i32
    %c0_i32_0 = arith.constant 0 : i32
    %c0_i32_1 = arith.constant 0 : i32
    return %c0_i32, %c0_i32_0 : i32, i32
  }
  func.func @transform_2(%arg0: i32) -> (i32, i32) {
    %c0_i32 = arith.constant 0 : i32
    %c0_i32_0 = arith.constant 0 : i32
    %c0_i32_1 = arith.constant 0 : i32
    return %c0_i32, %c0_i32_0 : i32, i32
  }
  func.func @transform_3(%arg0: i32) -> (i32, i32) {
    %c0_i32 = arith.constant 0 : i32
    %c0_i32_0 = arith.constant 0 : i32
    %c0_i32_1 = arith.constant 0 : i32
    return %c0_i32, %c0_i32_0 : i32, i32
  }
  func.func @transform_4(%arg0: i32) -> (i32, i32) {
    %c0_i32 = arith.constant 0 : i32
    %c0_i32_0 = arith.constant 0 : i32
    %c0_i32_1 = arith.constant 0 : i32
    return %c0_i32, %c0_i32_0 : i32, i32
  }
  func.func @transform_5(%arg0: i32) -> (i32, i32) {
    %c0_i32 = arith.constant 0 : i32
    %c0_i32_0 = arith.constant 0 : i32
    %c0_i32_1 = arith.constant 0 : i32
    return %c0_i32, %c0_i32_0 : i32, i32
  }
  func.func @transform_6(%arg0: i32) -> (i32, i32) {
    %c0_i32 = arith.constant 0 : i32
    %c0_i32_0 = arith.constant 0 : i32
    %c0_i32_1 = arith.constant 0 : i32
    return %c0_i32, %c0_i32_0 : i32, i32
  }
  func.func @transform_7(%arg0: i32) -> (i32, i32) {
    %c0_i32 = arith.constant 0 : i32
    %c0_i32_0 = arith.constant 0 : i32
    %c0_i32_1 = arith.constant 0 : i32
    return %c0_i32, %c0_i32_0 : i32, i32
  }
  func.func @transform_8(%arg0: i32) -> (i32, i32) {
    %c0_i32 = arith.constant 0 : i32
    %c0_i32_0 = arith.constant 0 : i32
    %c0_i32_1 = arith.constant 0 : i32
    return %c0_i32, %c0_i32_0 : i32, i32
  }
  func.func @transform_9(%arg0: i32) -> (i32, i32) {
    %c0_i32 = arith.constant 0 : i32
    %c0_i32_0 = arith.constant 0 : i32
    return %arg0, %c0_i32 : i32, i32
  }
  func.func @transform_10(%arg0: i32) -> (i32, i32) {
    %c0_i32 = arith.constant 0 : i32
    %c0_i32_0 = arith.constant 0 : i32
    return %arg0, %c0_i32 : i32, i32
  }
}

</mosaic_0001>

<bundles_post_ra>
// kernel: adaptive_mlp_forward.1
= control target key start
LH: loop header
LB: loop body
LE: loop exit
PB: predicated region body
PF: predicated region fallthrough
CT: control target
= control target key end

     0   :  { %16 = vsyncpa [#allocation3], 0  ;;  %s5635_s0 = inlined_call_operand.vmem [shape: f32[256,128], index: 0, kind: input, shape index: {}]   ;;  %s5636_s1 = inlined_call_operand.vmem [shape: bf16[128,768], index: 1, kind: input, shape index: {}]   ;;  %s5637_s2 = inlined_call_operand.vmem [shape: f32[1,768], index: 2, kind: input, shape index: {}]   ;;  %s5638_s3 = inlined_call_operand.hbm [shape: bf16[512,512], index: 3, kind: input, shape index: {}]   ;;  %s5639_s4 = inlined_call_operand.vmem [shape: f32[1,512], index: 4, kind: input, shape index: {}]   ;;  %s5640_s5 = inlined_call_operand.vmem [shape: bf16[512,128], index: 5, kind: input, shape index: {}]   ;;  %s5641_s6 = inlined_call_operand.vmem [shape: f32[1,128], index: 6, kind: input, shape index: {}]   ;;  %s5642_s7 = inlined_call_operand.hbm [shape: bf16[256,128], index: 7, kind: input, shape index: {}]   ;;  %s5643_s8 = inlined_call_operand.vmem [shape: f32[1,128], index: 8, kind: input, shape index: {}]   ;;  %s5644_s9 = inlined_call_operand.vmem [shape: f32[256,128], index: 9, kind: output, shape index: {0}]   ;;  %s5645_s10 = inlined_call_operand.vmem [shape: f32[256,128], index: 10, kind: output, shape index: {1}]  }
   0x1   :  { %17 = vsyncpa [#allocation5], 0  ;;  %s4605_s13 = smov 0  }
   0x2 LB: > { %s4543_s14 = smov [#allocation2]   ;;  %s3598_s16 = sadd.s32 4294967295, %s4541_s13   ;;  %s4541_s13 = sphi %s4605_s13, %s23_s13  }
   0x3   : > { %s292_s15 = sshll.u32 %s4543_s14, 4  ;;  %p3600_p0 = scmp.ge.s32.totalorder %s4541_s13, 1  ;;  %s293_s15 = int_to_ptr.vmem [resolvable:$true] %s292_s15 }
   0x4   : > { %p274_p1 = scmp.lt.s32.totalorder %s4541_s13, 3  ;;  %p4619_p3 = scmp.eq.s32.totalorder %s3598_s16, 0 }
   0x5   : > { %s4544_s19 = smov [#allocation4]   ;;  %s4486_s22 = scalar_lea.vmem %s293_s15, 16384 }
   0x6   : > { %p4613_p2 = pnand %p3600_p0, %p274_p1  ;;  %s314_s20 = sshll.u32 %s4544_s19, 4  ;;  %s315_s20 = int_to_ptr.vmem [resolvable:$true] %s314_s20 }
   0x7   : > { %p4487_p7 = scmp.ne.s32.totalorder %s293_s15, %s4486_s22  ;;  %p4494_p10 = scmp.lt.s32.totalorder %s293_s15, %s293_s15 }
   0x8   : > { %p4057_p4 = pneg %p4613_p2  ;;  %p4495_p11 = scmp.lt.s32.totalorder %s4486_s22, %s4486_s22 }
   0xa   : > { %p4627_p5 = pnand %p4619_p3, %p4057_p4  ;;  %p4496_p12 = por %p4495_p11, %p4494_p10 }
   0xc   : > { %p4477_p6 = pneg %p4627_p5 }
   0xe   : > { %p4489_p8 = pnand %p4487_p7, %p4477_p6 }
  0x10   : > { %p4490_p9 = pneg %p4489_p8 }
  0x12   : > { %p4497_p13 = pnand %p4496_p12, %p4490_p9 }
  0x14   : > { %4500 = shalt.err (!%p4497_p13)
}
  0x15   : > { %s4545_s23 = smov 256   ;;  %s4546_s24 = smov 16  }
  0x16   : > { %4060 = dma.hbm_to_vmem [thread:$0]  (!%p4627_p5), %s5638_s3, 16384, %s293_s15, [#allocation3], %s4545_s23, %s4545_s23, %s4546_s24  }
  0x17   : > { %s4512_s27 = scalar_lea.vmem %s315_s20, 2048  ;;  %p4520_p7 = scmp.lt.s32.totalorder %s315_s20, %s315_s20 }
  0x18   : > { %p4513_p0 = scmp.ne.s32.totalorder %s315_s20, %s4512_s27  ;;  %p4521_p8 = scmp.lt.s32.totalorder %s4512_s27, %s4512_s27 }
  0x1a   : > { %p4515_p1 = pnand %p4513_p0, %p4477_p6  ;;  %p4522_p10 = por %p4521_p8, %p4520_p7 }
  0x1c   : > { %p4516_p4 = pneg %p4515_p1 }
  0x1e   : > { %p4523_p9 = pnand %p4522_p10, %p4516_p4 }
  0x20   : > { %4526 = shalt.err (!%p4523_p9)
}
  0x21   : > { %s4547_s28 = smov 64   ;;  %s4548_s29 = smov 4  }
  0x22   : > { %4063 = dma.hbm_to_vmem [thread:$0]  (!%p4627_p5), %s5642_s7, 2048, %s315_s20, [#allocation5], %s4547_s28, %s4547_s28, %s4548_s29  }
  0x23   : > { %342 = sbr.rel (%p4613_p2) target bundleno = 854 (0x356), region = 56 }
  0x28   : > { %4532 = dma.done.wait (%p4619_p3), [#allocation3], 16384  }
  0x29   : > { %4534 = vsyncadd (%p4619_p3), [#allocation3], 4294950912 }
  0x2a   : > { %4536 = dma.done.wait (%p4619_p3), [#allocation5], 2048  }
  0x2b   : > { %4538 = vsyncadd (%p4619_p3), [#allocation5], 4294965248  ;;  %v4549_v0 = vmov 0   ;;  %v4083_v1 = vld [vmem:[%s5636_s1 + $0x154] ss:$24 sps:$4 sm:$0xff]   ;;  %s3607_s24 = sshll.u32 %s3598_s16, 4 }
  0x2c   : > { %784 = vmatprep.mubr.bf16.mxu0 %v4549_v0  ;;  %897 = vmatprep.mubr.bf16.mxu1 %v4549_v0  ;;  %v4085_v2 = vld [vmem:[%s5636_s1 + $0x15c] ss:$24 sps:$4 sm:$0xff]   ;;  %v4087_v3 = vld [vmem:[%s5636_s1 + $0x150] ss:$24 sps:$4 sm:$0xff]   ;;  %v4091_v6 = vld [vmem:[%s5636_s1 + $0x12c] ss:$24 sps:$4 sm:$0xff]  }
  0x2d   : > { %752 = vmatprep.subr.bf16.mxu0 %v4083_v1  ;;  %v4088_v4 = vld [vmem:[%s5636_s1 + $0x158] ss:$24 sps:$4 sm:$0xff]   ;;  %865 = vmatprep.subr.bf16.mxu1 %v4085_v2  ;;  %v4089_v5 = vld [vmem:[%s5636_s1 + $0x124] ss:$24 sps:$4 sm:$0xff]   ;;  %v4094_v8 = vld [vmem:[%s5636_s1 + $0x128] ss:$24 sps:$4 sm:$0xff]  }
  0x2e   : > { %753 = vmatpush1.bf16.msra.mxu0 %v4087_v3  ;;  %866 = vmatpush1.bf16.msra.mxu1 %v4088_v4  ;;  %v4093_v7 = vld [vmem:[%s5636_s1 + $0x120] ss:$24 sps:$4 sm:$0xff]   ;;  %v4095_v9 = vld [vmem:[%s5636_s1 + $0xf4] ss:$24 sps:$4 sm:$0xff]   ;;  %v4099_v11 = vld [vmem:[%s5636_s1 + $0xf0] ss:$24 sps:$4 sm:$0xff]  }
  0x2f   : > { %754 = vmatprep.subr.bf16.mxu0 %v4089_v5  ;;  %867 = vmatprep.subr.bf16.mxu1 %v4091_v6  ;;  %v4097_v10 = vld [vmem:[%s5636_s1 + $0xfc] ss:$24 sps:$4 sm:$0xff]   ;;  %v4100_v12 = vld [vmem:[%s5636_s1 + $0xf8] ss:$24 sps:$4 sm:$0xff]   ;;  %v4103_v14 = vld [vmem:[%s5636_s1 + $0xcc] ss:$24 sps:$4 sm:$0xff]  }
  0x30   : > { %v4101_v13 = vld [vmem:[%s5636_s1 + $0xc4] ss:$24 sps:$4 sm:$0xff]   ;;  %v4105_v15 = vld [vmem:[%s5636_s1 + $0xc0] ss:$24 sps:$4 sm:$0xff]   ;;  %v4107_v17 = vld [vmem:[%s5636_s1 + $0x94] ss:$24 sps:$4 sm:$0xff]  }
  0x31   : > { %v4106_v16 = vld [vmem:[%s5636_s1 + $0xc8] ss:$24 sps:$4 sm:$0xff]   ;;  %v4109_v18 = vld [vmem:[%s5636_s1 + $0x9c] ss:$24 sps:$4 sm:$0xff]   ;;  %p390_p2 = scmp.lt.s32.totalorder %s3607_s24, 31 }
  0x32   : > { %755 = vmatpush1.bf16.msra.mxu0 %v4093_v7  ;;  %868 = vmatpush1.bf16.msra.mxu1 %v4094_v8  ;;  %v4111_v19 = vld [vmem:[%s5636_s1 + $0x90] ss:$24 sps:$4 sm:$0xff]   ;;  %v4113_v21 = vld [vmem:[%s5636_s1 + $0x64] ss:$24 sps:$4 sm:$0xff]   ;;  %v4117_v23 = vld [vmem:[%s5636_s1 + $0x60] ss:$24 sps:$4 sm:$0xff]  }
  0x33   : > { %756 = vmatprep.subr.bf16.mxu0 %v4095_v9  ;;  %869 = vmatprep.subr.bf16.mxu1 %v4097_v10  ;;  %v4112_v20 = vld [vmem:[%s5636_s1 + $0x98] ss:$24 sps:$4 sm:$0xff]   ;;  %v4115_v22 = vld [vmem:[%s5636_s1 + $0x6c] ss:$24 sps:$4 sm:$0xff]   ;;  %s5650_s24 = smov (!%p390_p2, %s3607_s24), 31 }
  0x34   : > { %v4118_v24 = vld [vmem:[%s5636_s1 + $0x68] ss:$24 sps:$4 sm:$0xff]   ;;  %v4119_v25 = vld [vmem:[%s5636_s1 + $0x34] ss:$24 sps:$4 sm:$0xff]   ;;  %s4741_s11 = sshll.u32 %s5650_s24, 3 }
  0x35   : > { %v4121_v26 = vld [vmem:[%s5636_s1 + $0x3c] ss:$24 sps:$4 sm:$0xff]   ;;  %v4123_v27 = vld [vmem:[%s5636_s1 + $0x30] ss:$24 sps:$4 sm:$0xff]   ;;  %s4753_s20 = scalar_lea.vmem %s5635_s0, %s4741_s11  ;;  %v4127_v30 = vld [vmem:[%s5636_s1 + $0xc] ss:$24 sps:$4 sm:$0xff]   ;;  %s5498_s16 = scalar_lea.vmem %s5645_s10, %s4741_s11 }
  0x36   : > { %757 = vmatpush1.bf16.msra.mxu0 %v4099_v11  ;;  %870 = vmatpush1.bf16.msra.mxu1 %v4100_v12  ;;  %v4124_v28 = vld [vmem:[%s5636_s1 + $0x38] ss:$24 sps:$4 sm:$0xff]   ;;  %v4125_v29 = vld [vmem:[%s5636_s1 + $0x4] ss:$24 sps:$4 sm:$0xff]   ;;  %v4130_v32 = vld [vmem:[%s5636_s1 + $0x8] ss:$24 sps:$4 sm:$0xff]   ;;  %s5517_s17 = scalar_lea.vmem %s5644_s9, %s4741_s11 }
  0x37   : > { %758 = vmatprep.subr.bf16.mxu0 %v4101_v13  ;;  %871 = vmatprep.subr.bf16.mxu1 %v4103_v14  ;;  %v4129_v31 = vld [vmem:[%s5636_s1] ss:$24 sps:$4 sm:$0xff]   ;;  %v409_v34 = vld [vmem:[%s4753_s20 + $0x8] sm:$0xff]  ;;  %v4133_v35 = vld [vmem:[%s5636_s1 + $0x164] ss:$24 sps:$4 sm:$0xff]  }
  0x38   : > { %v408_v33 = vld [vmem:[%s4753_s20] sm:$0xff]  ;;  %v4136_v38 = vld [vmem:[%s5636_s1 + $0x134] ss:$24 sps:$4 sm:$0xff]   ;;  %v411_v40 = vld [vmem:[%s4753_s20 + $0x18] sm:$0xff] }
  0x39   : > { %v4772_v36 = vpack.c.bf16 %v409_v34, %v408_v33  ;;  %v4131_v37 = vld [vmem:[%s5636_s1 + $0x160] ss:$24 sps:$4 sm:$0xff]   ;;  %v410_v39 = vld [vmem:[%s4753_s20 + $0x10] sm:$0xff]  ;;  %v4139_v42 = vld [vmem:[%s5636_s1 + $0x104] ss:$24 sps:$4 sm:$0xff]  }
  0x3a   : > { %759 = vmatpush1.bf16.msra.mxu0 %v4105_v15  ;;  %872 = vmatpush1.bf16.msra.mxu1 %v4106_v16  ;;  %v4134_v41 = vld [vmem:[%s5636_s1 + $0x130] ss:$24 sps:$4 sm:$0xff]   ;;  %v4157_v44 = vld [vmem:[#allocation2 + $0xe4] ss:$16 sps:$4 sm:$0xff]   ;;  %v4792_v45 = vpack.c.bf16 %v411_v40, %v410_v39  ;;  %v4137_v46 = vld [vmem:[%s5636_s1 + $0x100] ss:$24 sps:$4 sm:$0xff]  }
  0x3b   : > { %760 = vmatprep.subr.bf16.mxu0 %v4107_v17  ;;  %873 = vmatprep.subr.bf16.mxu1 %v4109_v18  ;;  %v4155_v43 = vld [vmem:[#allocation2 + $0xe0] ss:$16 sps:$4 sm:$0xff]   ;;  %v4163_v47 = vld [vmem:[#allocation2 + $0xc4] ss:$16 sps:$4 sm:$0xff]   ;;  %v413_v52 = vld [vmem:[%s4753_s20 + $0x28] sm:$0xff] }
  0x3c   : > { %v4142_v48 = vld [vmem:[%s5636_s1 + $0xd4] ss:$24 sps:$4 sm:$0xff]   ;;  %v4161_v49 = vld [vmem:[#allocation2 + $0xc0] ss:$16 sps:$4 sm:$0xff]   ;;  %v4145_v54 = vld [vmem:[%s5636_s1 + $0xa4] ss:$24 sps:$4 sm:$0xff]  }
  0x3d   : > { %v412_v50 = vld [vmem:[%s4753_s20 + $0x20] sm:$0xff]  ;;  %v4140_v53 = vld [vmem:[%s5636_s1 + $0xd0] ss:$24 sps:$4 sm:$0xff]   ;;  %v4148_v59 = vld [vmem:[%s5636_s1 + $0x74] ss:$24 sps:$4 sm:$0xff]  }
  0x3e   : > { %761 = vmatpush1.bf16.msra.mxu0 %v4111_v19  ;;  %874 = vmatpush1.bf16.msra.mxu1 %v4112_v20  ;;  %v4169_v51 = vld [vmem:[#allocation2 + $0xa4] ss:$16 sps:$4 sm:$0xff]   ;;  %v4167_v55 = vld [vmem:[#allocation2 + $0xa0] ss:$16 sps:$4 sm:$0xff]   ;;  %v4812_v56 = vpack.c.bf16 %v413_v52, %v412_v50  ;;  %v415_v63 = vld [vmem:[%s4753_s20 + $0x38] sm:$0xff] }
  0x3f   : > { %762 = vmatprep.subr.bf16.mxu0 %v4113_v21  ;;  %875 = vmatprep.subr.bf16.mxu1 %v4115_v22  ;;  %v4143_v57 = vld [vmem:[%s5636_s1 + $0xa0] ss:$24 sps:$4 sm:$0xff]   ;;  %v4175_v58 = vld [vmem:[#allocation2 + $0x84] ss:$16 sps:$4 sm:$0xff]   ;;  %v4146_v1 = vld [vmem:[%s5636_s1 + $0x70] ss:$24 sps:$4 sm:$0xff]  }
  0x40   : > { %v4173_v60 = vld [vmem:[#allocation2 + $0x80] ss:$16 sps:$4 sm:$0xff]   ;;  %v4181_v62 = vld [vmem:[#allocation2 + $0x64] ss:$16 sps:$4 sm:$0xff]   ;;  %v417_v11 = vld [vmem:[%s4753_s20 + $0x48] sm:$0xff] }
  0x41   : > { %v414_v61 = vld [vmem:[%s4753_s20 + $0x30] sm:$0xff]  ;;  %v4151_v2 = vld [vmem:[%s5636_s1 + $0x44] ss:$24 sps:$4 sm:$0xff]   ;;  %v4149_v5 = vld [vmem:[%s5636_s1 + $0x40] ss:$24 sps:$4 sm:$0xff]  }
  0x42   : > { %763 = vmatpush1.bf16.msra.mxu0 %v4117_v23  ;;  %876 = vmatpush1.bf16.msra.mxu1 %v4118_v24  ;;  %v4179_v3 = vld [vmem:[#allocation2 + $0x60] ss:$16 sps:$4 sm:$0xff]   ;;  %v4832_v4 = vpack.c.bf16 %v415_v63, %v414_v61  ;;  %v4187_v6 = vld [vmem:[#allocation2 + $0x44] ss:$16 sps:$4 sm:$0xff]   ;;  %v419_v20 = vld [vmem:[%s4753_s20 + $0x58] sm:$0xff] }
  0x43   : > { %764 = vmatprep.subr.bf16.mxu0 %v4119_v25  ;;  %877 = vmatprep.subr.bf16.mxu1 %v4121_v26  ;;  %v4154_v7 = vld [vmem:[%s5636_s1 + $0x14] ss:$24 sps:$4 sm:$0xff]   ;;  %v4185_v8 = vld [vmem:[#allocation2 + $0x40] ss:$16 sps:$4 sm:$0xff]   ;;  %v423_v34 = vld [vmem:[%s4753_s20 + $0x78] sm:$0xff] }
  0x44   : > { %v416_v9 = vld [vmem:[%s4753_s20 + $0x40] sm:$0xff]  ;;  %v4152_v12 = vld [vmem:[%s5636_s1 + $0x10] ss:$24 sps:$4 sm:$0xff]  }
  0x45   : > { %v4193_v10 = vld [vmem:[#allocation2 + $0x24] ss:$16 sps:$4 sm:$0xff]   ;;  %v4191_v14 = vld [vmem:[#allocation2 + $0x20] ss:$16 sps:$4 sm:$0xff]   ;;  %v4849_v15 = vpack.c.bf16 %v417_v11, %v416_v9 }
  0x46   : > { %765 = vmatpush1.bf16.msra.mxu0 %v4123_v27  ;;  %878 = vmatpush1.bf16.msra.mxu1 %v4124_v28  ;;  %v4160_v13 = vld [vmem:[#allocation2 + $0x2e4] ss:$16 sps:$4 sm:$0xff]   ;;  %v4197_v17 = vld [vmem:[#allocation2] ss:$16 sps:$4 sm:$0xff]   ;;  %v421_v27 = vld [vmem:[%s4753_s20 + $0x68] sm:$0xff] }
  0x47   : > { %766 = vmatprep.subr.bf16.mxu0 %v4125_v29  ;;  %879 = vmatprep.subr.bf16.mxu1 %v4127_v30  ;;  %v4199_v16 = vld [vmem:[#allocation2 + $0x4] ss:$16 sps:$4 sm:$0xff]   ;;  %v4203_v21 = vld [vmem:[#allocation2 + $0x1e0] ss:$16 sps:$4 sm:$0xff]  }
  0x48   : > { %v418_v18 = vld [vmem:[%s4753_s20 + $0x50] sm:$0xff]  ;;  %v420_v26 = vld [vmem:[%s4753_s20 + $0x60] sm:$0xff] }
  0x49   : > { %v4205_v19 = vld [vmem:[#allocation2 + $0x1e4] ss:$16 sps:$4 sm:$0xff]   ;;  %v4857_v22 = vpack.c.bf16 %v419_v20, %v418_v18  ;;  %v4209_v23 = vld [vmem:[#allocation2 + $0x1c0] ss:$16 sps:$4 sm:$0xff]   ;;  %v4865_v29 = vpack.c.bf16 %v421_v27, %v420_v26 }
  0x4a   : > { %767 = vmatpush1.bf16.msra.mxu0 %v4129_v31  ;;  %880 = vmatpush1.bf16.msra.mxu1 %v4130_v32  ;;  %v4211_v24 = vld [vmem:[#allocation2 + $0x1c4] ss:$16 sps:$4 sm:$0xff]   ;;  %v4215_v28 = vld [vmem:[#allocation2 + $0x1a0] ss:$16 sps:$4 sm:$0xff]  }
  0x4b   : > { %978 = vmatprep.subr.bf16.mxu0 %v4133_v35  ;;  %2009 = vmatprep.subr.bf16.mxu1 %v4157_v44  ;;  %v4217_v25 = vld [vmem:[#allocation2 + $0x1a4] ss:$16 sps:$4 sm:$0xff]   ;;  %v4221_v31 = vld [vmem:[#allocation2 + $0x180] ss:$16 sps:$4 sm:$0xff]  }
  0x4c   : > { %v4223_v30 = vld [vmem:[#allocation2 + $0x184] ss:$16 sps:$4 sm:$0xff]   ;;  %v4227_v35 = vld [vmem:[#allocation2 + $0x160] ss:$16 sps:$4 sm:$0xff]  }
  0x4d   : > { %785 = vmatmul.mubr.bf16.vlgmr.msra.gmra.mxu0 %v4772_v36  ;;  %898 = vmatmul.mubr.bf16.vlgmr.msra.gmra.mxu1 %v4772_v36  ;;  %v4229_v32 = vld [vmem:[#allocation2 + $0x164] ss:$16 sps:$4 sm:$0xff]   ;;  %v4164_v40 = vld [vmem:[#allocation2 + $0x2c0] ss:$16 sps:$4 sm:$0xff]  }
  0x4e   : > { %794 = vmatprep.mubr.bf16.mxu0 %v4549_v0  ;;  %907 = vmatprep.mubr.bf16.mxu1 %v4549_v0  ;;  %v422_v33 = vld [vmem:[%s4753_s20 + $0x70] sm:$0xff]  ;;  %v4902_v18 = vld [vmem:[%s5637_s2] sm:$0x3f] }
  0x4f   : > { %979 = vmatpush1.bf16.msra.mxu0 %v4131_v37  ;;  %2010 = vmatpush1.bf16.msra.mxu1 %v4155_v43  ;;  %v4873_v37 = vpack.c.bf16 %v423_v34, %v422_v33  ;;  %v4166_v39 = vld [vmem:[#allocation2 + $0x2c4] ss:$16 sps:$4 sm:$0xff]   ;;  %v4233_v43 = vld [vmem:[#allocation2 + $0x140] ss:$16 sps:$4 sm:$0xff]  }
  0x50   : > { %980 = vmatprep.subr.bf16.mxu0 %v4136_v38  ;;  %2011 = vmatprep.subr.bf16.mxu1 %v4163_v47  ;;  %v4158_v38 = vld [vmem:[#allocation2 + $0x2e0] ss:$16 sps:$4 sm:$0xff]   ;;  %v4178_v47 = vld [vmem:[#allocation2 + $0x284] ss:$16 sps:$4 sm:$0xff]  }
  0x51   : > { %v4170_v44 = vld [vmem:[#allocation2 + $0x2a0] ss:$16 sps:$4 sm:$0xff]   ;;  %v4184_v50 = vld [vmem:[#allocation2 + $0x264] ss:$16 sps:$4 sm:$0xff]  }
  0x52   : > { %v4182_v52 = vld [vmem:[#allocation2 + $0x260] ss:$16 sps:$4 sm:$0xff]   ;;  %v4214_v61 = vld [vmem:[#allocation2 + $0x3c4] ss:$16 sps:$4 sm:$0xff]  }
  0x53   : > { %981 = vmatpush1.bf16.msra.mxu0 %v4134_v41  ;;  %2012 = vmatpush1.bf16.msra.mxu1 %v4161_v49  ;;  %v4235_v41 = vld [vmem:[#allocation2 + $0x144] ss:$16 sps:$4 sm:$0xff]   ;;  %v4242_v9 = vld [vmem:[#allocation2 + $0x320] ss:$16 sps:$4 sm:$0xff]  }
  0x54   : > { %982 = vmatprep.subr.bf16.mxu0 %v4139_v42  ;;  %2013 = vmatprep.subr.bf16.mxu1 %v4169_v51  ;;  %v4172_v42 = vld [vmem:[#allocation2 + $0x2a4] ss:$16 sps:$4 sm:$0xff]   ;;  %v4245_v51 = vld [vmem:[#allocation2 + $0x100] ss:$16 sps:$4 sm:$0xff]  }
  0x55   : > { %795 = vmatmul.mubr.bf16.gmra.mxu0 %v4792_v45  ;;  %908 = vmatmul.mubr.bf16.gmra.mxu1 %v4792_v45  ;;  %v4247_v49 = vld [vmem:[#allocation2 + $0x104] ss:$16 sps:$4 sm:$0xff]   ;;  %v4248_v11 = vld [vmem:[#allocation2 + $0x300] ss:$16 sps:$4 sm:$0xff]  }
  0x56   : > { %804 = vmatprep.mubr.bf16.mxu0 %v4549_v0  ;;  %917 = vmatprep.mubr.bf16.mxu1 %v4549_v0  ;;  %v4220_v63 = vld [vmem:[#allocation2 + $0x3a4] ss:$16 sps:$4 sm:$0xff]  }
  0x57   : > { %983 = vmatpush1.bf16.msra.mxu0 %v4137_v46  ;;  %2014 = vmatpush1.bf16.msra.mxu1 %v4167_v55  ;;  %v4241_v46 = vld [vmem:[#allocation2 + $0x124] ss:$16 sps:$4 sm:$0xff]  }
  0x58   : > { %984 = vmatprep.subr.bf16.mxu0 %v4142_v48  ;;  %2015 = vmatprep.subr.bf16.mxu1 %v4175_v58  ;;  %v4239_v48 = vld [vmem:[#allocation2 + $0x120] ss:$16 sps:$4 sm:$0xff]   ;;  %v4196_v55 = vld [vmem:[#allocation2 + $0x224] ss:$16 sps:$4 sm:$0xff]  }
  0x59   : > { %v4202_v58 = vld [vmem:[#allocation2 + $0x204] ss:$16 sps:$4 sm:$0xff]  }
  0x5b   : > { %985 = vmatpush1.bf16.msra.mxu0 %v4140_v53  ;;  %2016 = vmatpush1.bf16.msra.mxu1 %v4173_v60  ;;  %v4253_v53 = vld [vmem:[#allocation2 + $0xec] ss:$16 sps:$4 sm:$0xff]   ;;  %v4208_v60 = vld [vmem:[#allocation2 + $0x3e4] ss:$16 sps:$4 sm:$0xff]  }
  0x5c   : > { %986 = vmatprep.subr.bf16.mxu0 %v4145_v54  ;;  %2017 = vmatprep.subr.bf16.mxu1 %v4181_v62  ;;  %v4190_v54 = vld [vmem:[#allocation2 + $0x244] ss:$16 sps:$4 sm:$0xff]   ;;  %v4212_v62 = vld [vmem:[#allocation2 + $0x3c0] ss:$16 sps:$4 sm:$0xff]  }
  0x5d   : > { %805 = vmatmul.mubr.bf16.gmra.mxu0 %v4812_v56  ;;  %918 = vmatmul.mubr.bf16.gmra.mxu1 %v4812_v56 }
  0x5e   : > { %814 = vmatprep.mubr.bf16.mxu0 %v4549_v0  ;;  %927 = vmatprep.mubr.bf16.mxu1 %v4549_v0 }
  0x5f   : > { %987 = vmatpush1.bf16.msra.mxu0 %v4143_v57  ;;  %2018 = vmatpush1.bf16.msra.mxu1 %v4179_v3  ;;  %v4194_v57 = vld [vmem:[#allocation2 + $0x220] ss:$16 sps:$4 sm:$0xff]  }
  0x60   : > { %988 = vmatprep.subr.bf16.mxu0 %v4148_v59  ;;  %2019 = vmatprep.subr.bf16.mxu1 %v4187_v6  ;;  %v4200_v59 = vld [vmem:[#allocation2 + $0x200] ss:$16 sps:$4 sm:$0xff]   ;;  %v4238_v6 = vld [vmem:[#allocation2 + $0x344] ss:$16 sps:$4 sm:$0xff]  }
  0x61   : > { %v4224_v3 = vld [vmem:[#allocation2 + $0x380] ss:$16 sps:$4 sm:$0xff]  }
  0x63   : > { %989 = vmatpush1.bf16.msra.mxu0 %v4146_v1  ;;  %2020 = vmatpush1.bf16.msra.mxu1 %v4185_v8  ;;  %v4218_v1 = vld [vmem:[#allocation2 + $0x3a0] ss:$16 sps:$4 sm:$0xff]   ;;  %v4244_v8 = vld [vmem:[#allocation2 + $0x324] ss:$16 sps:$4 sm:$0xff]  }
  0x64   : > { %990 = vmatprep.subr.bf16.mxu0 %v4151_v2  ;;  %2021 = vmatprep.subr.bf16.mxu1 %v4193_v10  ;;  %v4226_v2 = vld [vmem:[#allocation2 + $0x384] ss:$16 sps:$4 sm:$0xff]  }
  0x65   : > { %815 = vmatmul.mubr.bf16.gmra.mxu0 %v4832_v4  ;;  %928 = vmatmul.mubr.bf16.gmra.mxu1 %v4832_v4  ;;  %v4250_v10 = vld [vmem:[#allocation2 + $0x304] ss:$16 sps:$4 sm:$0xff]  }
  0x66   : > { %824 = vmatprep.mubr.bf16.mxu0 %v4549_v0  ;;  %937 = vmatprep.mubr.bf16.mxu1 %v4549_v0 }
  0x67   : > { %991 = vmatpush1.bf16.msra.mxu0 %v4149_v5  ;;  %2022 = vmatpush1.bf16.msra.mxu1 %v4191_v14  ;;  %v4230_v5 = vld [vmem:[#allocation2 + $0x360] ss:$16 sps:$4 sm:$0xff]  }
  0x68   : > { %992 = vmatprep.subr.bf16.mxu0 %v4154_v7  ;;  %2023 = vmatprep.subr.bf16.mxu1 %v4199_v16  ;;  %v4236_v7 = vld [vmem:[#allocation2 + $0x340] ss:$16 sps:$4 sm:$0xff]  }
  0x6b   : > { %993 = vmatpush1.bf16.msra.mxu0 %v4152_v12  ;;  %2024 = vmatpush1.bf16.msra.mxu1 %v4197_v17  ;;  %v4256_v12 = vld [vmem:[#allocation2 + $0x2ec] ss:$16 sps:$4 sm:$0xff]  }
  0x6c   : > { %2122 = vmatprep.subr.bf16.mxu0 %v4160_v13  ;;  %2025 = vmatprep.subr.bf16.mxu1 %v4205_v19  ;;  %v482_v13 = vlaneseq }
  0x6d   : > { %825 = vmatmul.mubr.bf16.gmra.mxu0 %v4849_v15  ;;  %938 = vmatmul.mubr.bf16.gmra.mxu1 %v4849_v15 }
  0x6e   : > { %834 = vmatprep.mubr.bf16.mxu0 %v4549_v0  ;;  %947 = vmatprep.mubr.bf16.mxu1 %v4549_v0  ;;  %v4893_v14 = vshrl.u32 %v482_v13, 7 }
  0x6f   : > { %2026 = vmatpush2.bf16.msra.mxu1 %v4203_v21 }
  0x70   : > { %2027 = vmatprep.subr.bf16.mxu1 %v4211_v24  ;;  %v484_v16 = vsub.s32 0, %v4893_v14  ;;  %v492_v17 = vsub.s32 2, %v4893_v14 }
  0x72   : > { %v4922_v24 = vrot.slane %v4902_v18, %v492_v17 }
  0x73   : > { %2028 = vmatpush2.bf16.msra.mxu1 %v4209_v23  ;;  %v4917_v23 = vrot.slane %v4902_v18, %v484_v16 }
  0x74   : > { %2029 = vmatprep.subr.bf16.mxu1 %v4217_v25 }
  0x75   : > { %835 = vmatmul.mubr.bf16.gmra.mxu0 %v4857_v22  ;;  %948 = vmatmul.mubr.bf16.gmra.mxu1 %v4857_v22 }
  0x76   : > { %844 = vmatprep.mubr.bf16.mxu0 %v4549_v0  ;;  %957 = vmatprep.mubr.bf16.mxu1 %v4549_v0 }
  0x77   : > { %2030 = vmatpush2.bf16.msra.mxu1 %v4215_v28 }
  0x78   : > { %2031 = vmatprep.subr.bf16.mxu1 %v4223_v30 }
  0x7b   : > { %2032 = vmatpush2.bf16.msra.mxu1 %v4221_v31 }
  0x7c   : > { %2033 = vmatprep.subr.bf16.mxu1 %v4229_v32 }
  0x7d   : > { %845 = vmatmul.mubr.bf16.gmra.mxu0 %v4865_v29  ;;  %958 = vmatmul.mubr.bf16.gmra.mxu1 %v4865_v29 }
  0x7e   : > { %854 = vmatprep.mubr.bf16.mxu0 %v4549_v0  ;;  %967 = vmatprep.mubr.bf16.mxu1 %v4549_v0 }
  0x7f   : > { %2034 = vmatpush2.bf16.msra.mxu1 %v4227_v35 }
  0x80   : > { %2035 = vmatprep.subr.bf16.mxu1 %v4235_v41 }
  0x83   : > { %2036 = vmatpush2.bf16.msra.mxu1 %v4233_v43 }
  0x84   : > { %2037 = vmatprep.subr.bf16.mxu1 %v4241_v46 }
  0x85   : > { %855 = vmatmul.mubr.bf16.gmra.mxu0 %v4873_v37  ;;  %968 = vmatmul.mubr.bf16.gmra.mxu1 %v4873_v37 }
  0x86   : > { %1010 = vmatprep.mubr.bf16.mxu0 %v4549_v0 }
  0x87   : > { %2038 = vmatpush2.bf16.msra.mxu1 %v4239_v48 }
  0x88   : > { %2039 = vmatprep.subr.bf16.mxu1 %v4247_v49 }
  0x8b   : > { %2040 = vmatpush2.bf16.msra.mxu1 %v4245_v51 }
  0x8c   : > { %2235 = vmatprep.subr.bf16.mxu1 %v4253_v53 }
  0x8d   : > { %1011 = vmatmul.mubr.bf16.vlgmr.msra.gmra.mxu0 %v4772_v36  ;;  %v4176_v36 = vld [vmem:[#allocation2 + $0x280] ss:$16 sps:$4 sm:$0xff]  }
  0x8e   : > { %2123 = vmatpush1.bf16.msra.mxu0 %v4158_v38  ;;  %1020 = vmatprep.mubr.bf16.mxu0 %v4549_v0 }
  0x8f   : > { %2124 = vmatprep.subr.bf16.mxu0 %v4166_v39 }
  0x92   : > { %2125 = vmatpush1.bf16.msra.mxu0 %v4164_v40 }
  0x93   : > { %2126 = vmatprep.subr.bf16.mxu0 %v4172_v42 }
  0x95   : > { %1021 = vmatmul.mubr.bf16.gmra.mxu0 %v4792_v45  ;;  %v4188_v45 = vld [vmem:[#allocation2 + $0x240] ss:$16 sps:$4 sm:$0xff]  }
  0x96   : > { %2127 = vmatpush1.bf16.msra.mxu0 %v4170_v44  ;;  %1030 = vmatprep.mubr.bf16.mxu0 %v4549_v0 }
  0x97   : > { %2128 = vmatprep.subr.bf16.mxu0 %v4178_v47 }
  0x9a   : > { %2129 = vmatpush1.bf16.msra.mxu0 %v4176_v36 }
  0x9b   : > { %2130 = vmatprep.subr.bf16.mxu0 %v4184_v50 }
  0x9d   : > { %1031 = vmatmul.mubr.bf16.gmra.mxu0 %v4812_v56  ;;  %v4206_v56 = vld [vmem:[#allocation2 + $0x3e0] ss:$16 sps:$4 sm:$0xff]  }
  0x9e   : > { %2131 = vmatpush1.bf16.msra.mxu0 %v4182_v52  ;;  %1040 = vmatprep.mubr.bf16.mxu0 %v4549_v0 }
  0x9f   : > { %2132 = vmatprep.subr.bf16.mxu0 %v4190_v54  ;;  %v4251_v54 = vld [vmem:[#allocation2 + $0xe8] ss:$16 sps:$4 sm:$0xff]  }
  0xa2   : > { %2133 = vmatpush1.bf16.msra.mxu0 %v4188_v45  ;;  %v4254_v45 = vld [vmem:[#allocation2 + $0x2e8] ss:$16 sps:$4 sm:$0xff]  }
  0xa3   : > { %2134 = vmatprep.subr.bf16.mxu0 %v4196_v55 }
  0xa5   : > { %1041 = vmatmul.mubr.bf16.gmra.mxu0 %v4832_v4  ;;  %v4232_v4 = vld [vmem:[#allocation2 + $0x364] ss:$16 sps:$4 sm:$0xff]  }
  0xa6   : > { %2135 = vmatpush1.bf16.msra.mxu0 %v4194_v57  ;;  %1050 = vmatprep.mubr.bf16.mxu0 %v4549_v0 }
  0xa7   : > { %2136 = vmatprep.subr.bf16.mxu0 %v4202_v58 }
  0xaa   : > { %2137 = vmatpush1.bf16.msra.mxu0 %v4200_v59 }
  0xab   : > { %2138 = vmatprep.subr.bf16.mxu0 %v4208_v60  ;;  %v4259_v60 = vld [vmem:[#allocation2 + $0xcc] ss:$16 sps:$4 sm:$0xff]  }
  0xad   : > { %1051 = vmatmul.mubr.bf16.gmra.mxu0 %v4849_v15  ;;  %v496_v15 = vsub.s32 3, %v4893_v14 }
  0xae   : > { %2139 = vmatpush2.bf16.msra.mxu0 %v4206_v56  ;;  %1060 = vmatprep.mubr.bf16.mxu0 %v4549_v0  ;;  %v4262_v56 = vld [vmem:[#allocation2 + $0x2cc] ss:$16 sps:$4 sm:$0xff]  }
  0xaf   : > { %2140 = vmatprep.subr.bf16.mxu0 %v4214_v61 }
  0xb2   : > { %2141 = vmatpush2.bf16.msra.mxu0 %v4212_v62 }
  0xb3   : > { %2142 = vmatprep.subr.bf16.mxu0 %v4220_v63 }
  0xb5   : > { %1061 = vmatmul.mubr.bf16.gmra.mxu0 %v4857_v22  ;;  %v4912_v22 = vrot.slane %v4902_v18, %v496_v15 }
  0xb6   : > { %2143 = vmatpush2.bf16.msra.mxu0 %v4218_v1  ;;  %1070 = vmatprep.mubr.bf16.mxu0 %v4549_v0 }
  0xb7   : > { %2144 = vmatprep.subr.bf16.mxu0 %v4226_v2 }
  0xba   : > { %2145 = vmatpush2.bf16.msra.mxu0 %v4224_v3 }
  0xbb   : > { %2146 = vmatprep.subr.bf16.mxu0 %v4232_v4 }
  0xbd   : > { %1071 = vmatmul.mubr.bf16.gmra.mxu0 %v4865_v29 }
  0xbe   : > { %2147 = vmatpush2.bf16.msra.mxu0 %v4230_v5  ;;  %1080 = vmatprep.mubr.bf16.mxu0 %v4549_v0  ;;  %v488_v0 = vsub.s32 1, %v4893_v14 }
  0xbf   : > { %2148 = vmatprep.subr.bf16.mxu0 %v4238_v6 }
  0xc0   : > { %v4907_v21 = vrot.slane %v4902_v18, %v488_v0 }
  0xc2   : > { %2149 = vmatpush2.bf16.msra.mxu0 %v4236_v7 }
  0xc3   : > { %2150 = vmatprep.subr.bf16.mxu0 %v4244_v8  ;;  %v4257_v8 = vld [vmem:[#allocation2 + $0xc8] ss:$16 sps:$4 sm:$0xff]  }
  0xc5   : > { %1081 = vmatmul.mubr.bf16.gmra.mxu0 %v4873_v37 }
  0xc6   : > { %2151 = vmatpush2.bf16.msra.mxu0 %v4242_v9  ;;  %v4260_v9 = vld [vmem:[#allocation2 + $0x2c8] ss:$16 sps:$4 sm:$0xff]  }
  0xc7   : > { %2152 = vmatprep.subr.bf16.mxu0 %v4250_v10 }
  0xca   : > { %2153 = vmatpush2.bf16.msra.mxu0 %v4248_v11 }
  0xcb   : > { %2348 = vmatprep.subr.bf16.mxu0 %v4256_v12 }
 0x10d   : > { %v786_v19 = vpop.f32.mrf.mxu0  ;;  %v899_v20 = vpop.f32.mrf.mxu1 }
 0x10e   : > { %v787_v33 = vadd.f32 %v786_v19, %v4917_v23  ;;  %v900_v34 = vadd.f32 %v899_v20, %v4922_v24  ;;  %v4265_v19 = vld [vmem:[#allocation2 + $0xac] ss:$16 sps:$4 sm:$0xff]  }
 0x10f   : > { %v788_v25 = vpop.f32.mrf.mxu0  ;;  %v901_v26 = vpop.f32.mrf.mxu1  ;;  %v4268_v20 = vld [vmem:[#allocation2 + $0x2ac] ss:$16 sps:$4 sm:$0xff]  }
 0x110   : > { %v789_v29 = vadd.f32 %v788_v25, %v4907_v21  ;;  %v902_v30 = vadd.f32 %v901_v26, %v4912_v22  ;;  %v1091_v36 = vmax.f32 %v787_v33, 0.0  ;;  %v1093_v49 = vmax.f32 %v900_v34, 0.0  ;;  %v4263_v34 = vld [vmem:[#allocation2 + $0xa8] ss:$16 sps:$4 sm:$0xff]  }
 0x111   : > { %v790_v27 = vpop.f32.mrf.mxu0  ;;  %v903_v28 = vpop.f32.mrf.mxu1 }
 0x112   : > { %v791_v31 = vadd.f32 %v790_v27, %v4917_v23  ;;  %v904_v32 = vadd.f32 %v903_v28, %v4922_v24  ;;  %v1092_v44 = vmax.f32 %v789_v29, 0.0  ;;  %v1094_v46 = vmax.f32 %v902_v30, 0.0 }
 0x113   : > { %v792_v35 = vpop.f32.mrf.mxu0  ;;  %v905_v37 = vpop.f32.mrf.mxu1 }
 0x114   : > { %v793_v38 = vadd.f32 %v792_v35, %v4907_v21  ;;  %v906_v39 = vadd.f32 %v905_v37, %v4912_v22  ;;  %v1097_v40 = vmax.f32 %v791_v31, 0.0  ;;  %v1099_v41 = vmax.f32 %v904_v32, 0.0 }
 0x115   : > { %v796_v42 = vpop.f32.mrf.mxu0  ;;  %v909_v43 = vpop.f32.mrf.mxu1 }
 0x116   : > { %v1098_v47 = vmax.f32 %v793_v38, 0.0  ;;  %v1100_v48 = vmax.f32 %v906_v39, 0.0  ;;  %v4936_v55 = vpack.c.bf16 %v1097_v40, %v1091_v36  ;;  %v4938_v57 = vpack.c.bf16 %v1099_v41, %v1093_v49  ;;  %v4266_v41 = vld [vmem:[#allocation2 + $0x2a8] ss:$16 sps:$4 sm:$0xff]  }
 0x117   : > { %v798_v50 = vpop.f32.mrf.mxu0  ;;  %v911_v51 = vpop.f32.mrf.mxu1  ;;  %v797_v1 = vadd.f32 %v796_v42, %v4917_v23  ;;  %v910_v2 = vadd.f32 %v909_v43, %v4922_v24  ;;  %v4271_v42 = vld [vmem:[#allocation2 + $0x8c] ss:$16 sps:$4 sm:$0xff]  }
 0x118   : > { %v4932_v52 = vpack.c.bf16 %v1098_v47, %v1092_v44  ;;  %v4934_v53 = vpack.c.bf16 %v1100_v48, %v1094_v46  ;;  %v799_v61 = vadd.f32 %v798_v50, %v4907_v21  ;;  %v912_v3 = vadd.f32 %v911_v51, %v4912_v22  ;;  %v4274_v48 = vld [vmem:[#allocation2 + $0x28c] ss:$16 sps:$4 sm:$0xff]  }
 0x119   : > { %v800_v58 = vpop.f32.mrf.mxu0  ;;  %v913_v59 = vpop.f32.mrf.mxu1  ;;  %v1103_v28 = vmax.f32 %v797_v1, 0.0  ;;  %v1105_v29 = vmax.f32 %v910_v2, 0.0 }
 0x11a   : > { %v801_v62 = vadd.f32 %v800_v58, %v4917_v23  ;;  %v914_v63 = vadd.f32 %v913_v59, %v4922_v24  ;;  %2041 = vmatprep.mubr.bf16.mxu1 %v4932_v52  ;;  %2154 = vmatprep.mubr.bf16.mxu0 %v4934_v53  ;;  %v1104_v25 = vmax.f32 %v799_v61, 0.0  ;;  %v1106_v30 = vmax.f32 %v912_v3, 0.0  ;;  %v4269_v58 = vld [vmem:[#allocation2 + $0x88] ss:$16 sps:$4 sm:$0xff]  }
 0x11b   : > { %v802_v4 = vpop.f32.mrf.mxu0  ;;  %v915_v5 = vpop.f32.mrf.mxu1  ;;  %2042 = vmatmul.mubr.bf16.vlgmr.msra.gmra.mxu1 %v4936_v55  ;;  %2155 = vmatmul.mubr.bf16.vlgmr.msra.gmra.mxu0 %v4938_v57 }
 0x11c   : > { %v803_v6 = vadd.f32 %v802_v4, %v4907_v21  ;;  %v916_v7 = vadd.f32 %v915_v5, %v4912_v22  ;;  %2236 = vmatpush1.bf16.msra.mxu1 %v4251_v54  ;;  %2349 = vmatpush1.bf16.msra.mxu0 %v4254_v45  ;;  %v1109_v10 = vmax.f32 %v801_v62, 0.0  ;;  %v1111_v11 = vmax.f32 %v914_v63, 0.0  ;;  %v4272_v62 = vld [vmem:[#allocation2 + $0x288] ss:$16 sps:$4 sm:$0xff]   ;;  %v4277_v63 = vld [vmem:[#allocation2 + $0x6c] ss:$16 sps:$4 sm:$0xff]  }
 0x11d   : > { %v806_v12 = vpop.f32.mrf.mxu0  ;;  %v919_v13 = vpop.f32.mrf.mxu1  ;;  %2237 = vmatprep.subr.bf16.mxu1 %v4259_v60  ;;  %2350 = vmatprep.subr.bf16.mxu0 %v4262_v56 }
 0x11e   : > { %v1110_v26 = vmax.f32 %v803_v6, 0.0  ;;  %v1112_v27 = vmax.f32 %v916_v7, 0.0  ;;  %v4954_v35 = vpack.c.bf16 %v1109_v10, %v1103_v28  ;;  %v4956_v37 = vpack.c.bf16 %v1111_v11, %v1105_v29  ;;  %v4283_v28 = vld [vmem:[#allocation2 + $0x4c] ss:$16 sps:$4 sm:$0xff]  }
 0x11f   : > { %v808_v31 = vpop.f32.mrf.mxu0  ;;  %v921_v32 = vpop.f32.mrf.mxu1  ;;  %v807_v36 = vadd.f32 %v806_v12, %v4917_v23  ;;  %v920_v49 = vadd.f32 %v919_v13, %v4922_v24  ;;  %v4275_v12 = vld [vmem:[#allocation2 + $0x68] ss:$16 sps:$4 sm:$0xff]  }
 0x120   : > { %2238 = vmatpush1.bf16.msra.mxu1 %v4257_v8  ;;  %2351 = vmatpush1.bf16.msra.mxu0 %v4260_v9  ;;  %v4952_v33 = vpack.c.bf16 %v1110_v26, %v1104_v25  ;;  %v4958_v40 = vpack.c.bf16 %v1112_v27, %v1106_v30  ;;  %v809_v43 = vadd.f32 %v808_v31, %v4907_v21  ;;  %v4280_v9 = vld [vmem:[#allocation2 + $0x26c] ss:$16 sps:$4 sm:$0xff]   ;;  %v4278_v27 = vld [vmem:[#allocation2 + $0x268] ss:$16 sps:$4 sm:$0xff]  }
 0x121   : > { %v810_v38 = vpop.f32.mrf.mxu0  ;;  %v923_v39 = vpop.f32.mrf.mxu1  ;;  %2239 = vmatprep.subr.bf16.mxu1 %v4265_v19  ;;  %2352 = vmatprep.subr.bf16.mxu0 %v4268_v20  ;;  %v922_v44 = vadd.f32 %v921_v32, %v4912_v22  ;;  %v1115_v5 = vmax.f32 %v807_v36, 0.0  ;;  %v1117_v6 = vmax.f32 %v920_v49, 0.0  ;;  %v4286_v32 = vld [vmem:[#allocation2 + $0x24c] ss:$16 sps:$4 sm:$0xff]   ;;  %v4284_v49 = vld [vmem:[#allocation2 + $0x248] ss:$16 sps:$4 sm:$0xff]  }
 0x122   : > { %v811_v46 = vadd.f32 %v810_v38, %v4917_v23  ;;  %v924_v47 = vadd.f32 %v923_v39, %v4922_v24  ;;  %2051 = vmatprep.mubr.bf16.mxu1 %v4952_v33  ;;  %2164 = vmatprep.mubr.bf16.mxu0 %v4958_v40  ;;  %v1116_v1 = vmax.f32 %v809_v43, 0.0 }
 0x123   : > { %v812_v50 = vpop.f32.mrf.mxu0  ;;  %v925_v51 = vpop.f32.mrf.mxu1  ;;  %2052 = vmatmul.mubr.bf16.gmra.mxu1 %v4954_v35  ;;  %2165 = vmatmul.mubr.bf16.gmra.mxu0 %v4956_v37  ;;  %v1118_v2 = vmax.f32 %v922_v44, 0.0  ;;  %v4281_v44 = vld [vmem:[#allocation2 + $0x48] ss:$16 sps:$4 sm:$0xff]  }
 0x124   : > { %v813_v54 = vadd.f32 %v812_v50, %v4907_v21  ;;  %v926_v45 = vadd.f32 %v925_v51, %v4912_v22  ;;  %2240 = vmatpush1.bf16.msra.mxu1 %v4263_v34  ;;  %v1121_v59 = vmax.f32 %v811_v46, 0.0  ;;  %v1123_v60 = vmax.f32 %v924_v47, 0.0  ;;  %2353 = vmatpush1.bf16.msra.mxu0 %v4266_v41  ;;  %v4289_v50 = vld [vmem:[#allocation2 + $0x2c] ss:$16 sps:$4 sm:$0xff]  }
 0x125   : > { %v816_v56 = vpop.f32.mrf.mxu0  ;;  %v929_v61 = vpop.f32.mrf.mxu1  ;;  %2241 = vmatprep.subr.bf16.mxu1 %v4271_v42  ;;  %2354 = vmatprep.subr.bf16.mxu0 %v4274_v48 }
 0x126   : > { %v1122_v3 = vmax.f32 %v813_v54, 0.0  ;;  %v1124_v4 = vmax.f32 %v926_v45, 0.0  ;;  %v4976_v13 = vpack.c.bf16 %v1121_v59, %v1115_v5  ;;  %v4978_v19 = vpack.c.bf16 %v1123_v60, %v1117_v6 }
 0x127   : > { %v818_v7 = vpop.f32.mrf.mxu0  ;;  %v931_v8 = vpop.f32.mrf.mxu1  ;;  %v817_v34 = vadd.f32 %v816_v56, %v4917_v23  ;;  %v930_v38 = vadd.f32 %v929_v61, %v4922_v24 }
 0x128   : > { %2242 = vmatpush1.bf16.msra.mxu1 %v4269_v58  ;;  %v4972_v10 = vpack.c.bf16 %v1122_v3, %v1116_v1  ;;  %v4974_v11 = vpack.c.bf16 %v1124_v4, %v1118_v2  ;;  %v819_v20 = vadd.f32 %v818_v7, %v4907_v21  ;;  %2355 = vmatpush1.bf16.msra.mxu0 %v4272_v62  ;;  %v4292_v62 = vld [vmem:[#allocation2 + $0x22c] ss:$16 sps:$4 sm:$0xff]   ;;  %v4287_v2 = vld [vmem:[#allocation2 + $0x28] ss:$16 sps:$4 sm:$0xff]  }
 0x129   : > { %v820_v25 = vpop.f32.mrf.mxu0  ;;  %v933_v26 = vpop.f32.mrf.mxu1  ;;  %2243 = vmatprep.subr.bf16.mxu1 %v4277_v63  ;;  %v932_v29 = vadd.f32 %v931_v8, %v4912_v22  ;;  %2356 = vmatprep.subr.bf16.mxu0 %v4280_v9  ;;  %v1127_v59 = vmax.f32 %v817_v34, 0.0  ;;  %v1129_v60 = vmax.f32 %v930_v38, 0.0  ;;  %v4290_v8 = vld [vmem:[#allocation2 + $0x228] ss:$16 sps:$4 sm:$0xff]   ;;  %v4295_v9 = vld [vmem:[#allocation2 + $0xc] ss:$16 sps:$4 sm:$0xff]  }
 0x12a   : > { %v821_v30 = vadd.f32 %v820_v25, %v4917_v23  ;;  %v934_v31 = vadd.f32 %v933_v26, %v4922_v24  ;;  %2061 = vmatprep.mubr.bf16.mxu1 %v4972_v10  ;;  %2174 = vmatprep.mubr.bf16.mxu0 %v4974_v11  ;;  %v1128_v51 = vmax.f32 %v819_v20, 0.0  ;;  %v4298_v26 = vld [vmem:[#allocation2 + $0x20c] ss:$16 sps:$4 sm:$0xff]   ;;  %v4293_v34 = vld [vmem:[#allocation2 + $0x8] ss:$16 sps:$4 sm:$0xff]  }
 0x12b   : > { %v822_v39 = vpop.f32.mrf.mxu0  ;;  %v935_v41 = vpop.f32.mrf.mxu1  ;;  %2062 = vmatmul.mubr.bf16.gmra.mxu1 %v4976_v13  ;;  %2175 = vmatmul.mubr.bf16.gmra.mxu0 %v4978_v19  ;;  %v1130_v54 = vmax.f32 %v932_v29, 0.0 }
 0x12c   : > { %v823_v42 = vadd.f32 %v822_v39, %v4907_v21  ;;  %v936_v43 = vadd.f32 %v935_v41, %v4912_v22  ;;  %2244 = vmatpush1.bf16.msra.mxu1 %v4275_v12  ;;  %v1133_v46 = vmax.f32 %v821_v30, 0.0  ;;  %v1135_v47 = vmax.f32 %v934_v31, 0.0  ;;  %2357 = vmatpush1.bf16.msra.mxu0 %v4278_v27 }
 0x12d   : > { %v826_v48 = vpop.f32.mrf.mxu0  ;;  %v939_v36 = vpop.f32.mrf.mxu1  ;;  %2245 = vmatprep.subr.bf16.mxu1 %v4283_v28  ;;  %2358 = vmatprep.subr.bf16.mxu0 %v4286_v32 }
 0x12e   : > { %v1134_v45 = vmax.f32 %v823_v42, 0.0  ;;  %v1136_v58 = vmax.f32 %v936_v43, 0.0  ;;  %v4996_v3 = vpack.c.bf16 %v1133_v46, %v1127_v59  ;;  %v4998_v4 = vpack.c.bf16 %v1135_v47, %v1129_v60  ;;  %v4296_v43 = vld [vmem:[#allocation2 + $0x208] ss:$16 sps:$4 sm:$0xff]  }
 0x12f   : > { %v828_v56 = vpop.f32.mrf.mxu0  ;;  %v941_v61 = vpop.f32.mrf.mxu1  ;;  %v827_v27 = vadd.f32 %v826_v48, %v4917_v23  ;;  %v940_v28 = vadd.f32 %v939_v36, %v4922_v24  ;;  %v4299_v60 = vld [vmem:[#allocation2 + $0x1e8] ss:$16 sps:$4 sm:$0xff]  }
 0x130   : > { %2246 = vmatpush1.bf16.msra.mxu1 %v4281_v44  ;;  %v4992_v63 = vpack.c.bf16 %v1134_v45, %v1128_v51  ;;  %v4994_v1 = vpack.c.bf16 %v1136_v58, %v1130_v54  ;;  %v829_v5 = vadd.f32 %v828_v56, %v4907_v21  ;;  %2359 = vmatpush1.bf16.msra.mxu0 %v4284_v49  ;;  %v4301_v44 = vld [vmem:[#allocation2 + $0x1ec] ss:$16 sps:$4 sm:$0xff]  }
 0x131   : > { %v830_v6 = vpop.f32.mrf.mxu0  ;;  %v943_v7 = vpop.f32.mrf.mxu1  ;;  %2247 = vmatprep.subr.bf16.mxu1 %v4289_v50  ;;  %v942_v12 = vadd.f32 %v941_v61, %v4912_v22  ;;  %2360 = vmatprep.subr.bf16.mxu0 %v4292_v62  ;;  %v1139_v49 = vmax.f32 %v827_v27, 0.0  ;;  %v1141_v50 = vmax.f32 %v940_v28, 0.0  ;;  %v4304_v45 = vld [vmem:[#allocation2 + $0x3ec] ss:$16 sps:$4 sm:$0xff]  }
 0x132   : > { %v831_v20 = vadd.f32 %v830_v6, %v4917_v23  ;;  %v944_v25 = vadd.f32 %v943_v7, %v4922_v24  ;;  %2071 = vmatprep.mubr.bf16.mxu1 %v4992_v63  ;;  %2184 = vmatprep.mubr.bf16.mxu0 %v4994_v1  ;;  %v1140_v46 = vmax.f32 %v829_v5, 0.0  ;;  %v4302_v6 = vld [vmem:[#allocation2 + $0x3e8] ss:$16 sps:$4 sm:$0xff]   ;;  %v4307_v7 = vld [vmem:[#allocation2 + $0x1cc] ss:$16 sps:$4 sm:$0xff]  }
 0x133   : > { %v832_v29 = vpop.f32.mrf.mxu0  ;;  %v945_v30 = vpop.f32.mrf.mxu1  ;;  %2072 = vmatmul.mubr.bf16.gmra.mxu1 %v4996_v3  ;;  %2185 = vmatmul.mubr.bf16.gmra.mxu0 %v4998_v4  ;;  %v1142_v47 = vmax.f32 %v942_v12, 0.0 }
 0x134   : > { %v833_v31 = vadd.f32 %v832_v29, %v4907_v21  ;;  %v946_v32 = vadd.f32 %v945_v30, %v4912_v22  ;;  %2248 = vmatpush1.bf16.msra.mxu1 %v4287_v2  ;;  %v1145_v38 = vmax.f32 %v831_v20, 0.0  ;;  %v1147_v39 = vmax.f32 %v944_v25, 0.0  ;;  %2361 = vmatpush1.bf16.msra.mxu0 %v4290_v8  ;;  %v4310_v20 = vld [vmem:[#allocation2 + $0x3cc] ss:$16 sps:$4 sm:$0xff]  }
 0x135   : > { %v836_v41 = vpop.f32.mrf.mxu0  ;;  %v949_v42 = vpop.f32.mrf.mxu1  ;;  %2249 = vmatprep.subr.bf16.mxu1 %v4295_v9  ;;  %2362 = vmatprep.subr.bf16.mxu0 %v4298_v26 }
 0x136   : > { %v1146_v48 = vmax.f32 %v833_v31, 0.0  ;;  %v1148_v36 = vmax.f32 %v946_v32, 0.0  ;;  %v5016_v56 = vpack.c.bf16 %v1145_v38, %v1139_v49  ;;  %v5018_v61 = vpack.c.bf16 %v1147_v39, %v1141_v50  ;;  %v4305_v31 = vld [vmem:[#allocation2 + $0x1c8] ss:$16 sps:$4 sm:$0xff]  }
 0x137   : > { %v838_v51 = vpop.f32.mrf.mxu0  ;;  %v951_v54 = vpop.f32.mrf.mxu1  ;;  %v837_v25 = vadd.f32 %v836_v41, %v4917_v23  ;;  %v950_v26 = vadd.f32 %v949_v42, %v4922_v24  ;;  %v4308_v41 = vld [vmem:[#allocation2 + $0x3c8] ss:$16 sps:$4 sm:$0xff]   ;;  %v4313_v42 = vld [vmem:[#allocation2 + $0x1ac] ss:$16 sps:$4 sm:$0xff]  }
 0x138   : > { %2250 = vmatpush1.bf16.msra.mxu1 %v4293_v34  ;;  %v5012_v58 = vpack.c.bf16 %v1146_v48, %v1140_v46  ;;  %v5014_v59 = vpack.c.bf16 %v1148_v36, %v1142_v47  ;;  %v839_v62 = vadd.f32 %v838_v51, %v4907_v21  ;;  %2363 = vmatpush1.bf16.msra.mxu0 %v4296_v43  ;;  %v4316_v51 = vld [vmem:[#allocation2 + $0x3ac] ss:$16 sps:$4 sm:$0xff]  }
 0x139   : > { %v840_v2 = vpop.f32.mrf.mxu0  ;;  %v953_v5 = vpop.f32.mrf.mxu1  ;;  %2251 = vmatprep.subr.bf16.mxu1 %v4301_v44  ;;  %v952_v8 = vadd.f32 %v951_v54, %v4912_v22  ;;  %2364 = vmatprep.subr.bf16.mxu0 %v4304_v45  ;;  %v1151_v48 = vmax.f32 %v837_v25, 0.0  ;;  %v1153_v36 = vmax.f32 %v950_v26, 0.0  ;;  %v4322_v26 = vld [vmem:[#allocation2 + $0x38c] ss:$16 sps:$4 sm:$0xff]  }
 0x13a   : > { %v841_v9 = vadd.f32 %v840_v2, %v4917_v23  ;;  %v954_v12 = vadd.f32 %v953_v5, %v4922_v24  ;;  %2081 = vmatprep.mubr.bf16.mxu1 %v5012_v58  ;;  %2194 = vmatprep.mubr.bf16.mxu0 %v5014_v59  ;;  %v1152_v43 = vmax.f32 %v839_v62, 0.0 }
 0x13b   : > { %v842_v27 = vpop.f32.mrf.mxu0  ;;  %v955_v28 = vpop.f32.mrf.mxu1  ;;  %2082 = vmatmul.mubr.bf16.gmra.mxu1 %v5016_v56  ;;  %2195 = vmatmul.mubr.bf16.gmra.mxu0 %v5018_v61  ;;  %v1154_v44 = vmax.f32 %v952_v8, 0.0  ;;  %v4314_v8 = vld [vmem:[#allocation2 + $0x3a8] ss:$16 sps:$4 sm:$0xff]  }
 0x13c   : > { %v843_v29 = vadd.f32 %v842_v27, %v4907_v21  ;;  %v956_v30 = vadd.f32 %v955_v28, %v4912_v22  ;;  %2252 = vmatpush2.bf16.msra.mxu1 %v4299_v60  ;;  %v1157_v32 = vmax.f32 %v841_v9, 0.0  ;;  %v1159_v34 = vmax.f32 %v954_v12, 0.0  ;;  %2365 = vmatpush2.bf16.msra.mxu0 %v4302_v6  ;;  %v4311_v60 = vld [vmem:[#allocation2 + $0x1a8] ss:$16 sps:$4 sm:$0xff]   ;;  %v4319_v9 = vld [vmem:[#allocation2 + $0x18c] ss:$16 sps:$4 sm:$0xff]  }
 0x13d   : > { %v846_v38 = vpop.f32.mrf.mxu0  ;;  %v959_v39 = vpop.f32.mrf.mxu1  ;;  %2253 = vmatprep.subr.bf16.mxu1 %v4307_v7  ;;  %2366 = vmatprep.subr.bf16.mxu0 %v4310_v20 }
 0x13e   : > { %v1158_v46 = vmax.f32 %v843_v29, 0.0  ;;  %v1160_v47 = vmax.f32 %v956_v30, 0.0  ;;  %v5036_v2 = vpack.c.bf16 %v1157_v32, %v1151_v48  ;;  %v5038_v5 = vpack.c.bf16 %v1159_v34, %v1153_v36  ;;  %v4317_v34 = vld [vmem:[#allocation2 + $0x188] ss:$16 sps:$4 sm:$0xff]  }
 0x13f   : > { %v848_v49 = vpop.f32.mrf.mxu0  ;;  %v961_v50 = vpop.f32.mrf.mxu1  ;;  %v847_v27 = vadd.f32 %v846_v38, %v4917_v23  ;;  %v960_v28 = vadd.f32 %v959_v39, %v4922_v24  ;;  %v4320_v39 = vld [vmem:[#allocation2 + $0x388] ss:$16 sps:$4 sm:$0xff]  }
 0x140   : > { %2254 = vmatpush2.bf16.msra.mxu1 %v4305_v31  ;;  %v5032_v54 = vpack.c.bf16 %v1158_v46, %v1152_v43  ;;  %v5034_v45 = vpack.c.bf16 %v1160_v47, %v1154_v44  ;;  %v849_v62 = vadd.f32 %v848_v49, %v4907_v21  ;;  %2367 = vmatpush2.bf16.msra.mxu0 %v4308_v41  ;;  %v4325_v44 = vld [vmem:[#allocation2 + $0x16c] ss:$16 sps:$4 sm:$0xff]  }
 0x141   : > { %v850_v6 = vpop.f32.mrf.mxu0  ;;  %v963_v7 = vpop.f32.mrf.mxu1  ;;  %2255 = vmatprep.subr.bf16.mxu1 %v4313_v42  ;;  %v962_v12 = vadd.f32 %v961_v50, %v4912_v22  ;;  %2368 = vmatprep.subr.bf16.mxu0 %v4316_v51  ;;  %v1163_v49 = vmax.f32 %v847_v27, 0.0  ;;  %v1165_v50 = vmax.f32 %v960_v28, 0.0  ;;  %v4326_v28 = vld [vmem:[#allocation2 + $0x368] ss:$16 sps:$4 sm:$0xff]  }
 0x142   : > { %v851_v20 = vadd.f32 %v850_v6, %v4917_v23  ;;  %v964_v25 = vadd.f32 %v963_v7, %v4922_v24  ;;  %2091 = vmatprep.mubr.bf16.mxu1 %v5032_v54  ;;  %2204 = vmatprep.mubr.bf16.mxu0 %v5034_v45  ;;  %v1164_v46 = vmax.f32 %v849_v62, 0.0  ;;  %v4328_v7 = vld [vmem:[#allocation2 + $0x36c] ss:$16 sps:$4 sm:$0xff]  }
 0x143   : > { %v852_v29 = vpop.f32.mrf.mxu0  ;;  %v965_v30 = vpop.f32.mrf.mxu1  ;;  %2092 = vmatmul.mubr.bf16.gmra.mxu1 %v5036_v2  ;;  %2205 = vmatmul.mubr.bf16.gmra.mxu0 %v5038_v5  ;;  %v1166_v47 = vmax.f32 %v962_v12, 0.0 }
 0x144   : > { %v853_v31 = vadd.f32 %v852_v29, %v4907_v21  ;;  %v966_v32 = vadd.f32 %v965_v30, %v4912_v22  ;;  %2256 = vmatpush2.bf16.msra.mxu1 %v4311_v60  ;;  %v1169_v41 = vmax.f32 %v851_v20, 0.0  ;;  %v1171_v42 = vmax.f32 %v964_v25, 0.0  ;;  %2369 = vmatpush2.bf16.msra.mxu0 %v4314_v8  ;;  %v4331_v29 = vld [vmem:[#allocation2 + $0x14c] ss:$16 sps:$4 sm:$0xff]  }
 0x145   : > { %v856_v43 = vpop.f32.mrf.mxu0  ;;  %v969_v38 = vpop.f32.mrf.mxu1  ;;  %2257 = vmatprep.subr.bf16.mxu1 %v4319_v9  ;;  %2370 = vmatprep.subr.bf16.mxu0 %v4322_v26  ;;  %v500_v60 = vsub.s32 4, %v4893_v14  ;;  %v4323_v9 = vld [vmem:[#allocation2 + $0x168] ss:$16 sps:$4 sm:$0xff]  }
 0x146   : > { %v1170_v48 = vmax.f32 %v853_v31, 0.0  ;;  %v1172_v36 = vmax.f32 %v966_v32, 0.0  ;;  %v5057_v25 = vpack.c.bf16 %v1169_v41, %v1163_v49  ;;  %v5059_v62 = vpack.c.bf16 %v1171_v42, %v1165_v50  ;;  %v4337_v50 = vld [vmem:[#allocation2 + $0x12c] ss:$16 sps:$4 sm:$0xff]  }
 0x147   : > { %v858_v51 = vpop.f32.mrf.mxu0  ;;  %v971_v6 = vpop.f32.mrf.mxu1  ;;  %v857_v41 = vadd.f32 %v856_v43, %v4917_v23  ;;  %v4332_v43 = vld [vmem:[#allocation2 + $0x348] ss:$16 sps:$4 sm:$0xff]  }
 0x148   : > { %2258 = vmatpush2.bf16.msra.mxu1 %v4317_v34  ;;  %v5053_v20 = vpack.c.bf16 %v1170_v48, %v1164_v46  ;;  %v5055_v8 = vpack.c.bf16 %v1172_v36, %v1166_v47  ;;  %v859_v12 = vadd.f32 %v858_v51, %v4907_v21  ;;  %2371 = vmatpush2.bf16.msra.mxu0 %v4320_v39  ;;  %v4334_v34 = vld [vmem:[#allocation2 + $0x34c] ss:$16 sps:$4 sm:$0xff]   ;;  %v4329_v36 = vld [vmem:[#allocation2 + $0x148] ss:$16 sps:$4 sm:$0xff]  }
 0x149   : > { %v860_v26 = vpop.f32.mrf.mxu0  ;;  %v973_v27 = vpop.f32.mrf.mxu1  ;;  %2259 = vmatprep.subr.bf16.mxu1 %v4325_v44  ;;  %v972_v30 = vadd.f32 %v971_v6, %v4912_v22  ;;  %2372 = vmatprep.subr.bf16.mxu0 %v4328_v7  ;;  %v5070_v44 = vrot.slane %v4902_v18, %v500_v60  ;;  %v970_v46 = vadd.f32 %v969_v38, %v4922_v24 }
 0x14a   : > { %v861_v31 = vadd.f32 %v860_v26, %v4917_v23  ;;  %v974_v32 = vadd.f32 %v973_v27, %v4922_v24  ;;  %2101 = vmatprep.mubr.bf16.mxu1 %v5053_v20  ;;  %2214 = vmatprep.mubr.bf16.mxu0 %v5055_v8  ;;  %v1176_v49 = vmax.f32 %v859_v12, 0.0  ;;  %v1175_v24 = vmax.f32 %v857_v41, 0.0 }
 0x14b   : > { %v862_v42 = vpop.f32.mrf.mxu0  ;;  %v975_v39 = vpop.f32.mrf.mxu1  ;;  %2102 = vmatmul.mubr.bf16.gmra.mxu1 %v5057_v25  ;;  %2215 = vmatmul.mubr.bf16.gmra.mxu0 %v5059_v62  ;;  %v1178_v6 = vmax.f32 %v972_v30, 0.0  ;;  %v4338_v30 = vld [vmem:[#allocation2 + $0x328] ss:$16 sps:$4 sm:$0xff]  }
 0x14c   : > { %v863_v47 = vadd.f32 %v862_v42, %v4907_v21  ;;  %v976_v48 = vadd.f32 %v975_v39, %v4912_v22  ;;  %2260 = vmatpush2.bf16.msra.mxu1 %v4323_v9  ;;  %v1181_v23 = vmax.f32 %v861_v31, 0.0  ;;  %2373 = vmatpush2.bf16.msra.mxu0 %v4326_v28  ;;  %v1183_v7 = vmax.f32 %v974_v32, 0.0  ;;  %v4340_v21 = vld [vmem:[#allocation2 + $0x32c] ss:$16 sps:$4 sm:$0xff]   ;;  %v4335_v28 = vld [vmem:[#allocation2 + $0x128] ss:$16 sps:$4 sm:$0xff]  }
 0x14d   : > { %2261 = vmatprep.subr.bf16.mxu1 %v4331_v29  ;;  %v1012_v51 = vpop.f32.mrf.mxu0  ;;  %2374 = vmatprep.subr.bf16.mxu0 %v4334_v34  ;;  %v1177_v9 = vmax.f32 %v970_v46, 0.0  ;;  %v4343_v34 = vld [vmem:[#allocation2 + $0x10c] ss:$16 sps:$4 sm:$0xff]  }
 0x14e   : > { %v1182_v60 = vmax.f32 %v863_v47, 0.0  ;;  %v1184_v26 = vmax.f32 %v976_v48, 0.0  ;;  %v1013_v22 = vadd.f32 %v1012_v51, %v5070_v44  ;;  %v5083_v29 = vpack.c.bf16 %v1181_v23, %v1175_v24  ;;  %v4346_v39 = vld [vmem:[#allocation2 + $0x30c] ss:$16 sps:$4 sm:$0xff]   ;;  %v4341_v47 = vld [vmem:[#allocation2 + $0x108] ss:$16 sps:$4 sm:$0xff]  }
 0x14f   : > { %v5077_v38 = vpop.f32.mrf.mxu0  ;;  %v5085_v32 = vpack.c.bf16 %v1183_v7, %v1177_v9  ;;  %v4347_v23 = vld [vmem:[%s5640_s5 + $0x78] sm:$0xff]  }
 0x150   : > { %2262 = vmatpush2.bf16.msra.mxu1 %v4329_v36  ;;  %v5079_v12 = vpack.c.bf16 %v1182_v60, %v1176_v49  ;;  %v5081_v27 = vpack.c.bf16 %v1184_v26, %v1178_v6  ;;  %2375 = vmatpush2.bf16.msra.mxu0 %v4332_v43  ;;  %v1095_v41 = vmax.f32 %v1013_v22, 0.0  ;;  %v4344_v36 = vld [vmem:[#allocation2 + $0x308] ss:$16 sps:$4 sm:$0xff]   ;;  %v4350_v22 = vld [vmem:[%s5640_s5 + $0x30] sm:$0xff]  }
 0x151   : > { %2263 = vmatprep.subr.bf16.mxu1 %v4337_v50  ;;  %v1016_v31 = vpop.f32.mrf.mxu0  ;;  %2376 = vmatprep.subr.bf16.mxu0 %v4340_v21  ;;  %v4348_v6 = vld [vmem:[%s5640_s5 + $0x38] sm:$0xff]  }
 0x152   : > { %2111 = vmatprep.mubr.bf16.mxu1 %v5079_v12  ;;  %2224 = vmatprep.mubr.bf16.mxu0 %v5081_v27  ;;  %v1017_v42 = vadd.f32 %v1016_v31, %v5070_v44 }
 0x153   : > { %2112 = vmatmul.mubr.bf16.gmra.mxu1 %v5083_v29  ;;  %v5091_v46 = vpop.f32.mrf.mxu0  ;;  %2225 = vmatmul.mubr.bf16.gmra.mxu0 %v5085_v32 }
 0x154   : > { %2264 = vmatpush2.bf16.msra.mxu1 %v4335_v28  ;;  %v1101_v48 = vmax.f32 %v1017_v42, 0.0  ;;  %2267 = vmatprep.mubr.bf16.mxu1 %v4932_v52 }
 0x155   : > { %2377 = vmatpush2.bf16.msra.mxu0 %v4338_v30  ;;  %v1022_v49 = vpop.f32.mrf.mxu0  ;;  %2380 = vmatprep.mubr.bf16.mxu0 %v4934_v53  ;;  %v4349_v53 = vld [vmem:[%s5640_s5 + $0x70] sm:$0xff]  }
 0x156   : > { %2265 = vmatprep.subr.bf16.mxu1 %v4343_v34  ;;  %v5099_v43 = vpack.c.bf16 %v1101_v48, %v1095_v41  ;;  %v1023_v50 = vadd.f32 %v1022_v49, %v5070_v44  ;;  %2378 = vmatprep.subr.bf16.mxu0 %v4346_v39  ;;  %v4353_v34 = vld [vmem:[%s5640_s5 + $0x60] sm:$0xff]   ;;  %v504_v49 = vsub.s32 5, %v4893_v14 }
 0x157   : > { %v5102_v51 = vpop.f32.mrf.mxu0 }
 0x158   : > { %2266 = vmatpush2.bf16.msra.mxu1 %v4341_v47  ;;  %v1107_v7 = vmax.f32 %v1023_v50, 0.0  ;;  %v4354_v47 = vld [vmem:[%s5640_s5 + $0x20] sm:$0xff]  }
 0x159   : > { %2379 = vmatpush2.bf16.msra.mxu0 %v4344_v36  ;;  %v1026_v52 = vpop.f32.mrf.mxu0  ;;  %3857 = vmatprep.subr.bf16.mxu1 %v4347_v23 }
 0x15a   : > { %v1027_v60 = vadd.f32 %v1026_v52, %v5070_v44  ;;  %v4357_v52 = vld [vmem:[%s5640_s5 + $0x50] sm:$0xff]  }
 0x15b   : > { %2268 = vmatmul.mubr.bf16.vlgmr.msra.gmra.mxu1 %v4936_v55  ;;  %v5112_v26 = vpop.f32.mrf.mxu0  ;;  %v4351_v55 = vld [vmem:[%s5640_s5 + $0x68] sm:$0xff]  }
 0x15c   : > { %2381 = vmatmul.mubr.bf16.vlgmr.msra.gmra.mxu0 %v4938_v57  ;;  %2277 = vmatprep.mubr.bf16.mxu1 %v4952_v33  ;;  %v1113_v24 = vmax.f32 %v1027_v60, 0.0 }
 0x15d   : > { %2390 = vmatprep.mubr.bf16.mxu0 %v4958_v40  ;;  %v1032_v21 = vpop.f32.mrf.mxu0  ;;  %3858 = vmatpush3.bf16.msra.mxu1 %v4348_v6  ;;  %v4352_v40 = vld [vmem:[%s5640_s5 + $0x28] sm:$0xff]  }
 0x15e   : > { %v5120_v9 = vpack.c.bf16 %v1113_v24, %v1107_v7  ;;  %v1033_v28 = vadd.f32 %v1032_v21, %v5070_v44  ;;  %3859 = vmatprep.subr.bf16.mxu1 %v4349_v53  ;;  %v4358_v53 = vld [vmem:[%s5640_s5 + $0x10] sm:$0xff]   ;;  %v5170_v24 = vrot.slane %v4902_v18, %v504_v49 }
 0x15f   : > { %v5126_v57 = vpop.f32.mrf.mxu0 }
 0x160   : > { %v1119_v30 = vmax.f32 %v1033_v28, 0.0  ;;  %v4360_v28 = vld [vmem:[%s5640_s5 + $0x8] sm:$0xff]  }
 0x161   : > { %v1036_v33 = vpop.f32.mrf.mxu0  ;;  %3860 = vmatpush3.bf16.msra.mxu1 %v4350_v22 }
 0x162   : > { %v1037_v31 = vadd.f32 %v1036_v33, %v5070_v44  ;;  %3861 = vmatprep.subr.bf16.mxu1 %v4351_v55  ;;  %v4361_v33 = vld [vmem:[%s5640_s5 + $0x40] sm:$0xff]  }
 0x163   : > { %2278 = vmatmul.mubr.bf16.gmra.mxu1 %v4954_v35  ;;  %v5136_v41 = vpop.f32.mrf.mxu0  ;;  %v4355_v35 = vld [vmem:[%s5640_s5 + $0x58] sm:$0xff]  }
 0x164   : > { %2391 = vmatmul.mubr.bf16.gmra.mxu0 %v4956_v37  ;;  %2287 = vmatprep.mubr.bf16.mxu1 %v4972_v10  ;;  %v1125_v42 = vmax.f32 %v1037_v31, 0.0 }
 0x165   : > { %2400 = vmatprep.mubr.bf16.mxu0 %v4974_v11  ;;  %v1042_v39 = vpop.f32.mrf.mxu0  ;;  %3862 = vmatpush3.bf16.msra.mxu1 %v4352_v40  ;;  %v4356_v11 = vld [vmem:[%s5640_s5 + $0x18] sm:$0xff]  }
 0x166   : > { %v5144_v48 = vpack.c.bf16 %v1125_v42, %v1119_v30  ;;  %v1043_v36 = vadd.f32 %v1042_v39, %v5070_v44  ;;  %3863 = vmatprep.subr.bf16.mxu1 %v4353_v34  ;;  %v4362_v39 = vld [vmem:[%s5640_s5] sm:$0xff]  }
 0x167   : > { %v5150_v37 = vpop.f32.mrf.mxu0 }
 0x168   : > { %v1131_v23 = vmax.f32 %v1043_v36, 0.0 }
 0x169   : > { %v1046_v10 = vpop.f32.mrf.mxu0  ;;  %3864 = vmatpush3.bf16.msra.mxu1 %v4354_v47 }
 0x16a   : > { %v1047_v50 = vadd.f32 %v1046_v10, %v5070_v44  ;;  %3865 = vmatprep.subr.bf16.mxu1 %v4355_v35 }
 0x16b   : > { %2288 = vmatmul.mubr.bf16.gmra.mxu1 %v4976_v13  ;;  %v5161_v6 = vpop.f32.mrf.mxu0 }
 0x16c   : > { %2401 = vmatmul.mubr.bf16.gmra.mxu0 %v4978_v19  ;;  %2297 = vmatprep.mubr.bf16.mxu1 %v4992_v63  ;;  %v1137_v7 = vmax.f32 %v1047_v50, 0.0  ;;  %v4359_v19 = vld [vmem:[%s5640_s5 + $0x48] sm:$0xff]  }
 0x16d   : > { %2410 = vmatprep.mubr.bf16.mxu0 %v4994_v1  ;;  %v1052_v60 = vpop.f32.mrf.mxu0  ;;  %3866 = vmatpush3.bf16.msra.mxu1 %v4356_v11 }
 0x16e   : > { %v5172_v21 = vpack.c.bf16 %v1137_v7, %v1131_v23  ;;  %v1053_v13 = vadd.f32 %v1052_v60, %v5070_v44  ;;  %3867 = vmatprep.subr.bf16.mxu1 %v4357_v52 }
 0x16f   : > { %v1054_v63 = vpop.f32.mrf.mxu0 }
 0x170   : > { %v1055_v1 = vadd.f32 %v1054_v63, %v5170_v24  ;;  %v1143_v18 = vmax.f32 %v1053_v13, 0.0 }
 0x171   : > { %v1056_v22 = vpop.f32.mrf.mxu0  ;;  %3868 = vmatpush3.bf16.msra.mxu1 %v4358_v53 }
 0x172   : > { %v1057_v55 = vadd.f32 %v1056_v22, %v5070_v44  ;;  %3869 = vmatprep.subr.bf16.mxu1 %v4359_v19  ;;  %v1144_v30 = vmax.f32 %v1055_v1, 0.0 }
 0x173   : > { %2298 = vmatmul.mubr.bf16.gmra.mxu1 %v4996_v3  ;;  %v1058_v40 = vpop.f32.mrf.mxu0 }
 0x174   : > { %2411 = vmatmul.mubr.bf16.gmra.mxu0 %v4998_v4  ;;  %2307 = vmatprep.mubr.bf16.mxu1 %v5012_v58  ;;  %v1149_v31 = vmax.f32 %v1057_v55, 0.0  ;;  %v1059_v34 = vadd.f32 %v1058_v40, %v5170_v24  ;;  %v4363_v4 = vld [vmem:[#allocation4 + $0x78] sm:$0xff]  }
 0x175   : > { %2420 = vmatprep.mubr.bf16.mxu0 %v5014_v59  ;;  %v1062_v42 = vpop.f32.mrf.mxu0  ;;  %3870 = vmatpush3.bf16.msra.mxu1 %v4360_v28 }
 0x176   : > { %v5194_v47 = vpack.c.bf16 %v1149_v31, %v1143_v18  ;;  %v1150_v3 = vmax.f32 %v1059_v34, 0.0  ;;  %v1063_v36 = vadd.f32 %v1062_v42, %v5070_v44  ;;  %3871 = vmatprep.subr.bf16.mxu1 %v4361_v33 }
 0x177   : > { %v1064_v58 = vpop.f32.mrf.mxu0 }
 0x178   : > { %v5197_v35 = vpack.c.bf16 %v1150_v3, %v1144_v30  ;;  %v1065_v10 = vadd.f32 %v1064_v58, %v5170_v24  ;;  %v1155_v59 = vmax.f32 %v1063_v36, 0.0  ;;  %v4373_v3 = vld [vmem:[%s5640_s5 + $0xb8] sm:$0xff]   ;;  %v4387_v58 = vld [vmem:[%s5640_s5 + $0xd0] sm:$0xff]  }
 0x179   : > { %v1066_v11 = vpop.f32.mrf.mxu0  ;;  %3872 = vmatpush3.bf16.msra.mxu1 %v4362_v39 }
 0x17a   : > { %v1067_v49 = vadd.f32 %v1066_v11, %v5070_v44  ;;  %3985 = vmatprep.subr.bf16.mxu1 %v4363_v4  ;;  %v1156_v50 = vmax.f32 %v1065_v10, 0.0  ;;  %v4386_v4 = vld [vmem:[%s5640_s5 + $0x98] sm:$0xff]   ;;  %v4388_v10 = vld [vmem:[%s5640_s5 + $0x90] sm:$0xff]   ;;  %v4390_v11 = vld [vmem:[%s5640_s5 + $0xc8] sm:$0xff]  }
 0x17b   : > { %2308 = vmatmul.mubr.bf16.gmra.mxu1 %v5016_v56  ;;  %v1068_v23 = vpop.f32.mrf.mxu0 }
 0x17c   : > { %2421 = vmatmul.mubr.bf16.gmra.mxu0 %v5018_v61  ;;  %2317 = vmatprep.mubr.bf16.mxu1 %v5032_v54  ;;  %v1161_v52 = vmax.f32 %v1067_v49, 0.0  ;;  %v1069_v7 = vadd.f32 %v1068_v23, %v5170_v24  ;;  %v4393_v49 = vld [vmem:[%s5640_s5 + $0xc0] sm:$0xff]  }
 0x17d   : > { %2430 = vmatprep.mubr.bf16.mxu0 %v5034_v45  ;;  %v1072_v60 = vpop.f32.mrf.mxu0  ;;  %v4394_v23 = vld [vmem:[%s5640_s5 + $0x80] sm:$0xff]  }
 0x17e   : > { %v5206_v53 = vpack.c.bf16 %v1161_v52, %v1155_v59  ;;  %v1162_v13 = vmax.f32 %v1069_v7, 0.0  ;;  %v1073_v19 = vadd.f32 %v1072_v60, %v5070_v44  ;;  %v4392_v59 = vld [vmem:[%s5640_s5 + $0x88] sm:$0xff]  }
 0x17f   : > { %v1074_v63 = vpop.f32.mrf.mxu0 }
 0x180   : > { %v5209_v1 = vpack.c.bf16 %v1162_v13, %v1156_v50  ;;  %v1075_v56 = vadd.f32 %v1074_v63, %v5170_v24  ;;  %v1167_v22 = vmax.f32 %v1073_v19, 0.0  ;;  %v5285_v50 = vld [vmem:[%s5639_s4] sm:$0xf] }
 0x181   : > { %v1076_v61 = vpop.f32.mrf.mxu0  ;;  %v5292_v7 = vrot.slane %v5285_v50, %v488_v0  ;;  %v5297_v60 = vrot.slane %v5285_v50, %v484_v16 }
 0x182   : > { %v1077_v54 = vadd.f32 %v1076_v61, %v5070_v44  ;;  %v1168_v45 = vmax.f32 %v1075_v56, 0.0 }
 0x183   : > { %2318 = vmatmul.mubr.bf16.gmra.mxu1 %v5036_v2  ;;  %v1078_v28 = vpop.f32.mrf.mxu0 }
 0x184   : > { %2431 = vmatmul.mubr.bf16.gmra.mxu0 %v5038_v5  ;;  %2327 = vmatprep.mubr.bf16.mxu1 %v5053_v20  ;;  %v1173_v18 = vmax.f32 %v1077_v54, 0.0  ;;  %v1079_v55 = vadd.f32 %v1078_v28, %v5170_v24 }
 0x185   : > { %2440 = vmatprep.mubr.bf16.mxu0 %v5055_v8  ;;  %v1082_v33 = vpop.f32.mrf.mxu0  ;;  %v4371_v8 = vld [vmem:[%s5640_s5 + $0xf8] sm:$0xff]  }
 0x186   : > { %v5218_v40 = vpack.c.bf16 %v1173_v18, %v1167_v22  ;;  %v1174_v30 = vmax.f32 %v1079_v55, 0.0  ;;  %v1083_v31 = vadd.f32 %v1082_v33, %v5070_v44  ;;  %3921 = vmatprep.subr.bf16.mxu0 %v4371_v8 }
 0x187   : > { %v5221_v34 = vpop.f32.mrf.mxu0  ;;  %3922 = vmatpush3.bf16.msra.mxu0 %v4373_v3 }
 0x188   : > { %v5223_v2 = vpack.c.bf16 %v1174_v30, %v1168_v45  ;;  %v1179_v5 = vmax.f32 %v1083_v31, 0.0 }
 0x189   : > { %v1086_v42 = vpop.f32.mrf.mxu0 }
 0x18a   : > { %v1087_v20 = vadd.f32 %v1086_v42, %v5070_v44  ;;  %v4378_v44 = vld [vmem:[%s5640_s5 + $0xe8] sm:$0xff]  }
 0x18b   : > { %2328 = vmatmul.mubr.bf16.gmra.mxu1 %v5057_v25  ;;  %v4375_v25 = vld [vmem:[%s5640_s5 + $0xf0] sm:$0xff]   ;;  %v5287_v52 = vpop.f32.mrf.mxu0 }
 0x18c   : > { %2441 = vmatmul.mubr.bf16.gmra.mxu0 %v5059_v62  ;;  %2337 = vmatprep.mubr.bf16.mxu1 %v5079_v12  ;;  %v1185_v39 = vmax.f32 %v1087_v20, 0.0  ;;  %v4376_v62 = vld [vmem:[%s5640_s5 + $0xb0] sm:$0xff]   ;;  %v4380_v12 = vld [vmem:[%s5640_s5 + $0xa8] sm:$0xff]  }
 0x18d   : > { %2450 = vmatprep.mubr.bf16.mxu0 %v5081_v27  ;;  %3923 = vmatprep.subr.bf16.mxu0 %v4375_v25  ;;  %v4381_v27 = vld [vmem:[%s5640_s5 + $0xe0] sm:$0xff]  }
 0x18e   : > { %v5236_v36 = vpack.c.bf16 %v1185_v39, %v1179_v5  ;;  %3924 = vmatpush3.bf16.msra.mxu0 %v4376_v62 }
 0x18f   : > { %3925 = vmatprep.subr.bf16.mxu0 %v4378_v44 }
 0x192   : > { %3926 = vmatpush3.bf16.msra.mxu0 %v4380_v12 }
 0x193   : > { %2338 = vmatmul.mubr.bf16.gmra.mxu1 %v5083_v29  ;;  %v4382_v29 = vld [vmem:[%s5640_s5 + $0xa0] sm:$0xff]   ;;  %3927 = vmatprep.subr.bf16.mxu0 %v4381_v27 }
 0x194   : > { %2451 = vmatmul.mubr.bf16.gmra.mxu0 %v5085_v32  ;;  %v4384_v32 = vld [vmem:[%s5640_s5 + $0xd8] sm:$0xff]  }
 0x196   : > { %3928 = vmatpush3.bf16.msra.mxu0 %v4382_v29 }
 0x197   : > { %3929 = vmatprep.subr.bf16.mxu0 %v4384_v32 }
 0x19a   : > { %3930 = vmatpush3.bf16.msra.mxu0 %v4386_v4 }
 0x19b   : > { %3931 = vmatprep.subr.bf16.mxu0 %v4387_v58  ;;  %v4364_v58 = vld [vmem:[#allocation4 + $0x38] sm:$0xff]  }
 0x19e   : > { %3932 = vmatpush3.bf16.msra.mxu0 %v4388_v10 }
 0x19f   : > { %3933 = vmatprep.subr.bf16.mxu0 %v4390_v11 }
 0x1a2   : > { %3934 = vmatpush3.bf16.msra.mxu0 %v4392_v59  ;;  %v4365_v59 = vld [vmem:[#allocation4 + $0x70] sm:$0xff]  }
 0x1a3   : > { %3935 = vmatprep.subr.bf16.mxu0 %v4393_v49 }
 0x1a6   : > { %3936 = vmatpush3.bf16.msra.mxu0 %v4394_v23 }
 0x1db   : > { %v2043_v13 = vpop.f32.mrf.mxu1  ;;  %v2156_v19 = vpop.f32.mrf.mxu0 }
 0x1dc   : > { %v2044_v22 = vadd.f32 %v2043_v13, %v5297_v60 }
 0x1dd   : > { %v2045_v63 = vpop.f32.mrf.mxu1  ;;  %v2158_v56 = vpop.f32.mrf.mxu0 }
 0x1de   : > { %v2046_v61 = vadd.f32 %v2045_v63, %v5292_v7  ;;  %v2157_v16 = vadd.f32 %v2156_v19, %v2044_v22 }
 0x1df   : > { %v2047_v54 = vpop.f32.mrf.mxu1  ;;  %v2160_v28 = vpop.f32.mrf.mxu0 }
 0x1e0   : > { %v2048_v45 = vadd.f32 %v2047_v54, %v5297_v60  ;;  %v2159_v55 = vadd.f32 %v2158_v56, %v2046_v61  ;;  %v2461_v44 = vmax.f32 %v2157_v16, 0.0  ;;  %v4366_v54 = vld [vmem:[#allocation4 + $0x30] sm:$0xff]  }
 0x1e1   : > { %v2049_v18 = vpop.f32.mrf.mxu1  ;;  %v2162_v0 = vpop.f32.mrf.mxu0 }
 0x1e2   : > { %v2161_v33 = vadd.f32 %v2160_v28, %v2048_v45  ;;  %v2050_v30 = vadd.f32 %v2049_v18, %v5292_v7  ;;  %v2462_v39 = vmax.f32 %v2159_v55, 0.0  ;;  %v4367_v18 = vld [vmem:[#allocation4 + $0x68] sm:$0xff]  }
 0x1e3   : > { %v2053_v31 = vpop.f32.mrf.mxu1  ;;  %v2166_v5 = vpop.f32.mrf.mxu0 }
 0x1e4   : > { %v2163_v42 = vadd.f32 %v2162_v0, %v2050_v30  ;;  %v2465_v20 = vmax.f32 %v2161_v33, 0.0  ;;  %v2054_v12 = vadd.f32 %v2053_v31, %v5297_v60 }
 0x1e5   : > { %v2055_v8 = vpop.f32.mrf.mxu1  ;;  %v2168_v62 = vpop.f32.mrf.mxu0 }
 0x1e6   : > { %v2466_v3 = vmax.f32 %v2163_v42, 0.0  ;;  %v2056_v25 = vadd.f32 %v2055_v8, %v5292_v7  ;;  %v2525_v10 = vpack.c.bf16 %v2465_v20, %v2461_v44  ;;  %v2167_v63 = vadd.f32 %v2166_v5, %v2054_v12 }
 0x1e7   : > { %v2057_v27 = vpop.f32.mrf.mxu1  ;;  %v2170_v4 = vpop.f32.mrf.mxu0 }
 0x1e8   : > { %v2526_v29 = vpack.c.bf16 %v2466_v3, %v2462_v39  ;;  %v2058_v32 = vadd.f32 %v2057_v27, %v5297_v60  ;;  %v2169_v49 = vadd.f32 %v2168_v62, %v2056_v25  ;;  %v2469_v16 = vmax.f32 %v2167_v63, 0.0  ;;  %v4368_v39 = vld [vmem:[#allocation4 + $0x28] sm:$0xff]   ;;  %v4369_v62 = vld [vmem:[#allocation4 + $0x60] sm:$0xff]  }
 0x1e9   : > { %v2059_v11 = vpop.f32.mrf.mxu1  ;;  %v2172_v19 = vpop.f32.mrf.mxu0 }
 0x1ea   : > { %v2171_v23 = vadd.f32 %v2170_v4, %v2058_v32  ;;  %v2060_v13 = vadd.f32 %v2059_v11, %v5292_v7  ;;  %2852 = vmatprep.mubr.bf16.mxu1 %v2526_v29  ;;  %v2470_v0 = vmax.f32 %v2169_v49, 0.0  ;;  %v4370_v11 = vld [vmem:[#allocation4 + $0x20] sm:$0xff]  }
 0x1eb   : > { %v2063_v56 = vpop.f32.mrf.mxu1  ;;  %2853 = vmatmul.mubr.bf16.vlgmr.msra.gmra.mxu1 %v2525_v10  ;;  %v2176_v22 = vpop.f32.mrf.mxu0 }
 0x1ec   : > { %v2173_v61 = vadd.f32 %v2172_v19, %v2060_v13  ;;  %3986 = vmatpush3.bf16.msra.mxu1 %v4364_v58  ;;  %v2473_v28 = vmax.f32 %v2171_v23, 0.0  ;;  %v2064_v31 = vadd.f32 %v2063_v56, %v5297_v60  ;;  %v4372_v23 = vld [vmem:[#allocation4 + $0x58] sm:$0xff]  }
 0x1ed   : > { %v2065_v45 = vpop.f32.mrf.mxu1  ;;  %3987 = vmatprep.subr.bf16.mxu1 %v4365_v59  ;;  %v2178_v30 = vpop.f32.mrf.mxu0 }
 0x1ee   : > { %v2474_v55 = vmax.f32 %v2173_v61, 0.0  ;;  %v2066_v33 = vadd.f32 %v2065_v45, %v5292_v7  ;;  %v2529_v3 = vpack.c.bf16 %v2473_v28, %v2469_v16  ;;  %v2177_v32 = vadd.f32 %v2176_v22, %v2064_v31 }
 0x1ef   : > { %v2067_v42 = vpop.f32.mrf.mxu1  ;;  %v2180_v8 = vpop.f32.mrf.mxu0 }
 0x1f0   : > { %v2530_v5 = vpack.c.bf16 %v2474_v55, %v2470_v0  ;;  %v2068_v20 = vadd.f32 %v2067_v42, %v5297_v60  ;;  %3988 = vmatpush3.bf16.msra.mxu1 %v4366_v54  ;;  %v2179_v44 = vadd.f32 %v2178_v30, %v2066_v33  ;;  %v2477_v61 = vmax.f32 %v2177_v32, 0.0  ;;  %v4374_v0 = vld [vmem:[#allocation4 + $0x18] sm:$0xff]   ;;  %v4377_v30 = vld [vmem:[#allocation4 + $0x50] sm:$0xff]  }
 0x1f1   : > { %v2069_v25 = vpop.f32.mrf.mxu1  ;;  %3989 = vmatprep.subr.bf16.mxu1 %v4367_v18  ;;  %v2182_v29 = vpop.f32.mrf.mxu0 }
 0x1f2   : > { %v2181_v12 = vadd.f32 %v2180_v8, %v2068_v20  ;;  %v2070_v27 = vadd.f32 %v2069_v25, %v5292_v7  ;;  %2860 = vmatprep.mubr.bf16.mxu1 %v2530_v5  ;;  %v2478_v13 = vmax.f32 %v2179_v44, 0.0  ;;  %v4379_v25 = vld [vmem:[#allocation4 + $0x10] sm:$0xff]  }
 0x1f3   : > { %v2073_v4 = vpop.f32.mrf.mxu1  ;;  %2861 = vmatmul.mubr.bf16.gmra.mxu1 %v2529_v3  ;;  %v2186_v10 = vpop.f32.mrf.mxu0 }
 0x1f4   : > { %v2183_v58 = vadd.f32 %v2182_v29, %v2070_v27  ;;  %3990 = vmatpush3.bf16.msra.mxu1 %v4368_v39  ;;  %v2481_v59 = vmax.f32 %v2181_v12, 0.0  ;;  %v2074_v54 = vadd.f32 %v2073_v4, %v5297_v60  ;;  %v4383_v12 = vld [vmem:[#allocation4 + $0x48] sm:$0xff]  }
 0x1f5   : > { %v2075_v49 = vpop.f32.mrf.mxu1  ;;  %3991 = vmatprep.subr.bf16.mxu1 %v4369_v62  ;;  %v2188_v56 = vpop.f32.mrf.mxu0 }
 0x1f6   : > { %v2482_v19 = vmax.f32 %v2183_v58, 0.0  ;;  %v2076_v63 = vadd.f32 %v2075_v49, %v5292_v7  ;;  %v2533_v55 = vpack.c.bf16 %v2481_v59, %v2477_v61  ;;  %v2187_v20 = vadd.f32 %v2186_v10, %v2074_v54 }
 0x1f7   : > { %v2077_v28 = vpop.f32.mrf.mxu1  ;;  %v2190_v18 = vpop.f32.mrf.mxu0 }
 0x1f8   : > { %v2534_v22 = vpack.c.bf16 %v2482_v19, %v2478_v13  ;;  %v2078_v45 = vadd.f32 %v2077_v28, %v5297_v60  ;;  %3992 = vmatpush3.bf16.msra.mxu1 %v4370_v11  ;;  %v2189_v16 = vadd.f32 %v2188_v56, %v2076_v63  ;;  %v2485_v58 = vmax.f32 %v2187_v20, 0.0  ;;  %v4385_v13 = vld [vmem:[#allocation4 + $0x8] sm:$0xff]   ;;  %v4389_v56 = vld [vmem:[#allocation4 + $0x40] sm:$0xff]  }
 0x1f9   : > { %v2079_v33 = vpop.f32.mrf.mxu1  ;;  %3993 = vmatprep.subr.bf16.mxu1 %v4372_v23  ;;  %v2192_v5 = vpop.f32.mrf.mxu0 }
 0x1fa   : > { %v2191_v31 = vadd.f32 %v2190_v18, %v2078_v45  ;;  %v2080_v42 = vadd.f32 %v2079_v33, %v5292_v7  ;;  %2868 = vmatprep.mubr.bf16.mxu1 %v2534_v22  ;;  %v2486_v27 = vmax.f32 %v2189_v16, 0.0  ;;  %v4391_v33 = vld [vmem:[#allocation4] sm:$0xff]  }
 0x1fb   : > { %v2083_v8 = vpop.f32.mrf.mxu1  ;;  %2869 = vmatmul.mubr.bf16.gmra.mxu1 %v2533_v55  ;;  %v2196_v3 = vpop.f32.mrf.mxu0 }
 0x1fc   : > { %v2193_v39 = vadd.f32 %v2192_v5, %v2080_v42  ;;  %3994 = vmatpush3.bf16.msra.mxu1 %v4374_v0  ;;  %v2489_v62 = vmax.f32 %v2191_v31, 0.0  ;;  %v2084_v11 = vadd.f32 %v2083_v8, %v5297_v60 }
 0x1fd   : > { %v2085_v44 = vpop.f32.mrf.mxu1  ;;  %3995 = vmatprep.subr.bf16.mxu1 %v4377_v30  ;;  %v2198_v4 = vpop.f32.mrf.mxu0 }
 0x1fe   : > { %v2490_v29 = vmax.f32 %v2193_v39, 0.0  ;;  %v2086_v32 = vadd.f32 %v2085_v44, %v5292_v7  ;;  %v2537_v19 = vpack.c.bf16 %v2489_v62, %v2485_v58  ;;  %v2197_v45 = vadd.f32 %v2196_v3, %v2084_v11 }
 0x1ff   : > { %v2087_v59 = vpop.f32.mrf.mxu1  ;;  %v2200_v23 = vpop.f32.mrf.mxu0 }
 0x200   : > { %v2538_v10 = vpack.c.bf16 %v2490_v29, %v2486_v27  ;;  %v2088_v49 = vadd.f32 %v2087_v59, %v5297_v60  ;;  %3996 = vmatpush3.bf16.msra.mxu1 %v4379_v25  ;;  %v2199_v61 = vadd.f32 %v2198_v4, %v2086_v32  ;;  %v2493_v8 = vmax.f32 %v2197_v45, 0.0 }
 0x201   : > { %v2089_v63 = vpop.f32.mrf.mxu1  ;;  %3997 = vmatprep.subr.bf16.mxu1 %v4383_v12  ;;  %v2202_v22 = vpop.f32.mrf.mxu0 }
 0x202   : > { %v2201_v54 = vadd.f32 %v2200_v23, %v2088_v49  ;;  %v2090_v28 = vadd.f32 %v2089_v63, %v5292_v7  ;;  %2876 = vmatprep.mubr.bf16.mxu1 %v2538_v10  ;;  %v2494_v31 = vmax.f32 %v2199_v61, 0.0 }
 0x203   : > { %v2093_v18 = vpop.f32.mrf.mxu1  ;;  %2877 = vmatmul.mubr.bf16.gmra.mxu1 %v2537_v19  ;;  %v2206_v55 = vpop.f32.mrf.mxu0 }
 0x204   : > { %v2203_v0 = vadd.f32 %v2202_v22, %v2090_v28  ;;  %3998 = vmatpush3.bf16.msra.mxu1 %v4385_v13  ;;  %v2497_v30 = vmax.f32 %v2201_v54, 0.0  ;;  %v2094_v39 = vadd.f32 %v2093_v18, %v5297_v60 }
 0x205   : > { %v2095_v16 = vpop.f32.mrf.mxu1  ;;  %3999 = vmatprep.subr.bf16.mxu1 %v4389_v56  ;;  %v2208_v20 = vpop.f32.mrf.mxu0 }
 0x206   : > { %v2498_v42 = vmax.f32 %v2203_v0, 0.0  ;;  %v2096_v5 = vadd.f32 %v2095_v16, %v5292_v7  ;;  %v2541_v12 = vpack.c.bf16 %v2497_v30, %v2493_v8  ;;  %v2207_v11 = vadd.f32 %v2206_v55, %v2094_v39 }
 0x207   : > { %v2097_v25 = vpop.f32.mrf.mxu1  ;;  %v2210_v44 = vpop.f32.mrf.mxu0 }
 0x208   : > { %v2542_v62 = vpack.c.bf16 %v2498_v42, %v2494_v31  ;;  %v2098_v3 = vadd.f32 %v2097_v25, %v5297_v60  ;;  %4000 = vmatpush3.bf16.msra.mxu1 %v4391_v33  ;;  %v2209_v29 = vadd.f32 %v2208_v20, %v2096_v5  ;;  %v2501_v54 = vmax.f32 %v2207_v11, 0.0 }
 0x209   : > { %v2099_v27 = vpop.f32.mrf.mxu1  ;;  %v2212_v58 = vpop.f32.mrf.mxu0 }
 0x20a   : > { %v2211_v32 = vadd.f32 %v2210_v44, %v2098_v3  ;;  %v2100_v4 = vadd.f32 %v2099_v27, %v5292_v7  ;;  %2884 = vmatprep.mubr.bf16.mxu1 %v2542_v62  ;;  %v2502_v19 = vmax.f32 %v2209_v29, 0.0 }
 0x20b   : > { %v2103_v59 = vpop.f32.mrf.mxu1  ;;  %2885 = vmatmul.mubr.bf16.gmra.mxu1 %v2541_v12  ;;  %v2216_v49 = vpop.f32.mrf.mxu0 }
 0x20c   : > { %v2213_v10 = vadd.f32 %v2212_v58, %v2100_v4  ;;  %v2505_v23 = vmax.f32 %v2211_v32, 0.0  ;;  %v2104_v28 = vadd.f32 %v2103_v59, %v5297_v60 }
 0x20d   : > { %v2105_v13 = vpop.f32.mrf.mxu1  ;;  %v2218_v61 = vpop.f32.mrf.mxu0 }
 0x20e   : > { %v2506_v63 = vmax.f32 %v2213_v10, 0.0  ;;  %v2106_v56 = vadd.f32 %v2105_v13, %v5292_v7  ;;  %v2545_v55 = vpack.c.bf16 %v2505_v23, %v2501_v54  ;;  %v2217_v5 = vadd.f32 %v2216_v49, %v2104_v28 }
 0x20f   : > { %v2107_v22 = vpop.f32.mrf.mxu1  ;;  %v2220_v0 = vpop.f32.mrf.mxu0  ;;  %v1015_v10 = vadd.f32 %v5077_v38, %v5170_v24  ;;  %v1019_v49 = vadd.f32 %v5091_v46, %v5170_v24  ;;  %v5338_v54 = vrot.slane %v5285_v50, %v496_v15  ;;  %v5343_v38 = vrot.slane %v5285_v50, %v492_v17 }
 0x210   : > { %v2546_v45 = vpack.c.bf16 %v2506_v63, %v2502_v19  ;;  %v2108_v18 = vadd.f32 %v2107_v22, %v5297_v60  ;;  %v2219_v30 = vadd.f32 %v2218_v61, %v2106_v56  ;;  %v2509_v29 = vmax.f32 %v2217_v5, 0.0 }
 0x211   : > { %v2109_v33 = vpop.f32.mrf.mxu1  ;;  %v2222_v42 = vpop.f32.mrf.mxu0  ;;  %v1025_v5 = vadd.f32 %v5102_v51, %v5170_v24 }
 0x212   : > { %v2221_v16 = vadd.f32 %v2220_v0, %v2108_v18  ;;  %v2110_v31 = vadd.f32 %v2109_v33, %v5292_v7  ;;  %2892 = vmatprep.mubr.bf16.mxu1 %v2546_v45  ;;  %v2510_v3 = vmax.f32 %v2219_v30, 0.0  ;;  %v1096_v45 = vmax.f32 %v1015_v10, 0.0 }
 0x213   : > { %v2113_v20 = vpop.f32.mrf.mxu1  ;;  %2893 = vmatmul.mubr.bf16.gmra.mxu1 %v2545_v55  ;;  %v2226_v39 = vpop.f32.mrf.mxu0  ;;  %v1102_v18 = vmax.f32 %v1019_v49, 0.0 }
 0x214   : > { %v2223_v8 = vadd.f32 %v2222_v42, %v2110_v31  ;;  %v2513_v25 = vmax.f32 %v2221_v16, 0.0  ;;  %v2114_v32 = vadd.f32 %v2113_v20, %v5297_v60 }
 0x215   : > { %v2115_v62 = vpop.f32.mrf.mxu1  ;;  %v2228_v27 = vpop.f32.mrf.mxu0 }
 0x216   : > { %v2514_v44 = vmax.f32 %v2223_v8, 0.0  ;;  %v2116_v12 = vadd.f32 %v2115_v62, %v5292_v7  ;;  %v2549_v23 = vpack.c.bf16 %v2513_v25, %v2509_v29  ;;  %v1029_v25 = vadd.f32 %v5112_v26, %v5170_v24 }
 0x217   : > { %v2117_v4 = vpop.f32.mrf.mxu1  ;;  %v2230_v59 = vpop.f32.mrf.mxu0 }
 0x218   : > { %v2550_v58 = vpack.c.bf16 %v2514_v44, %v2510_v3  ;;  %v2118_v11 = vadd.f32 %v2117_v4, %v5297_v60  ;;  %v2229_v19 = vadd.f32 %v2228_v27, %v2116_v12  ;;  %v2227_v60 = vadd.f32 %v2226_v39, %v2114_v32 }
 0x219   : > { %v2119_v13 = vpop.f32.mrf.mxu1  ;;  %v2232_v61 = vpop.f32.mrf.mxu0  ;;  %v3047_v39 = vpack.c.bf16 %v1102_v18, %v1096_v45 }
 0x21a   : > { %v2231_v63 = vadd.f32 %v2230_v59, %v2118_v11  ;;  %v2120_v56 = vadd.f32 %v2119_v13, %v5292_v7  ;;  %2900 = vmatprep.mubr.bf16.mxu1 %v2550_v58  ;;  %v2518_v55 = vmax.f32 %v2229_v19, 0.0  ;;  %v2517_v16 = vmax.f32 %v2227_v60, 0.0 }
 0x21b   : > { %v2269_v46 = vpop.f32.mrf.mxu1  ;;  %2901 = vmatmul.mubr.bf16.gmra.mxu1 %v2549_v23  ;;  %v1108_v58 = vmax.f32 %v1025_v5, 0.0  ;;  %v1114_v59 = vmax.f32 %v1029_v25, 0.0 }
 0x21c   : > { %v2233_v28 = vadd.f32 %v2232_v61, %v2120_v56  ;;  %v2382_v22 = vpop.f32.mrf.mxu0  ;;  %v2521_v7 = vmax.f32 %v2231_v63, 0.0  ;;  %v2270_v31 = vadd.f32 %v2269_v46, %v5343_v38  ;;  %v1035_v46 = vadd.f32 %v5126_v57, %v5170_v24 }
 0x21d   : > { %v2271_v0 = vpop.f32.mrf.mxu1 }
 0x21e   : > { %v2522_v33 = vmax.f32 %v2233_v28, 0.0  ;;  %v2272_v30 = vadd.f32 %v2271_v0, %v5338_v54  ;;  %v2384_v15 = vpop.f32.mrf.mxu0  ;;  %v2553_v20 = vpack.c.bf16 %v2521_v7, %v2517_v16  ;;  %v2383_v27 = vadd.f32 %v2382_v22, %v2270_v31 }
 0x21f   : > { %v2273_v14 = vpop.f32.mrf.mxu1  ;;  %v1039_v28 = vadd.f32 %v5136_v41, %v5170_v24  ;;  %v1120_v57 = vmax.f32 %v1035_v46, 0.0 }
 0x220   : > { %v2554_v42 = vpack.c.bf16 %v2522_v33, %v2518_v55  ;;  %v2274_v17 = vadd.f32 %v2273_v14, %v5343_v38  ;;  %v2386_v50 = vpop.f32.mrf.mxu0  ;;  %v2385_v62 = vadd.f32 %v2384_v15, %v2272_v30  ;;  %v2463_v13 = vmax.f32 %v2383_v27, 0.0 }
 0x221   : > { %v2275_v8 = vpop.f32.mrf.mxu1  ;;  %v3049_v33 = vpack.c.bf16 %v1114_v59, %v1108_v58  ;;  %v1126_v14 = vmax.f32 %v1039_v28, 0.0 }
 0x222   : > { %v2387_v3 = vadd.f32 %v2386_v50, %v2274_v17  ;;  %v2276_v44 = vadd.f32 %v2275_v8, %v5338_v54  ;;  %v2388_v12 = vpop.f32.mrf.mxu0  ;;  %2908 = vmatprep.mubr.bf16.mxu1 %v2554_v42  ;;  %v2464_v10 = vmax.f32 %v2385_v62, 0.0 }
 0x223   : > { %v2279_v29 = vpop.f32.mrf.mxu1  ;;  %2909 = vmatmul.mubr.bf16.gmra.mxu1 %v2553_v20 }
 0x224   : > { %v2389_v32 = vadd.f32 %v2388_v12, %v2276_v44  ;;  %v2392_v4 = vpop.f32.mrf.mxu0  ;;  %3229 = vmatprep.mubr.bf16.mxu1 %v3047_v39  ;;  %v2467_v51 = vmax.f32 %v2387_v3, 0.0  ;;  %v2280_v19 = vadd.f32 %v2279_v29, %v5343_v38  ;;  %v1045_v44 = vadd.f32 %v5150_v37, %v5170_v24 }
 0x225   : > { %v2281_v11 = vpop.f32.mrf.mxu1  ;;  %v3051_v29 = vpack.c.bf16 %v1126_v14, %v1120_v57 }
 0x226   : > { %v2468_v49 = vmax.f32 %v2389_v32, 0.0  ;;  %v2282_v26 = vadd.f32 %v2281_v11, %v5338_v54  ;;  %v2394_v23 = vpop.f32.mrf.mxu0  ;;  %v2527_v22 = vpack.c.bf16 %v2467_v51, %v2463_v13  ;;  %v2393_v30 = vadd.f32 %v2392_v4, %v2280_v19 }
 0x227   : > { %v2283_v63 = vpop.f32.mrf.mxu1  ;;  %v1049_v32 = vadd.f32 %v5161_v6, %v5170_v24  ;;  %v1132_v37 = vmax.f32 %v1045_v44, 0.0 }
 0x228   : > { %v2528_v56 = vpack.c.bf16 %v2468_v49, %v2464_v10  ;;  %v2284_v61 = vadd.f32 %v2283_v63, %v5343_v38  ;;  %v2396_v60 = vpop.f32.mrf.mxu0  ;;  %v2395_v18 = vadd.f32 %v2394_v23, %v2282_v26  ;;  %v2471_v8 = vmax.f32 %v2393_v30, 0.0 }
 0x229   : > { %v2285_v45 = vpop.f32.mrf.mxu1  ;;  %v1138_v19 = vmax.f32 %v1049_v32, 0.0 }
 0x22a   : > { %v2397_v7 = vadd.f32 %v2396_v60, %v2284_v61  ;;  %v2286_v0 = vadd.f32 %v2285_v45, %v5338_v54  ;;  %v2398_v55 = vpop.f32.mrf.mxu0  ;;  %2949 = vmatprep.mubr.bf16.mxu0 %v2528_v56  ;;  %v2472_v17 = vmax.f32 %v2395_v18, 0.0 }
 0x22b   : > { %v2289_v15 = vpop.f32.mrf.mxu1  ;;  %2950 = vmatmul.mubr.bf16.vlgmr.msra.gmra.mxu0 %v2527_v22  ;;  %3230 = vmatmul.mubr.bf16.vlgmr.msra.gmra.mxu1 %v5099_v43 }
 0x22c   : > { %v2399_v16 = vadd.f32 %v2398_v55, %v2286_v0  ;;  %v2402_v31 = vpop.f32.mrf.mxu0  ;;  %3237 = vmatprep.mubr.bf16.mxu1 %v3049_v33  ;;  %v2475_v41 = vmax.f32 %v2397_v7, 0.0  ;;  %v2290_v39 = vadd.f32 %v2289_v15, %v5343_v38  ;;  %v3053_v15 = vpack.c.bf16 %v1138_v19, %v1132_v37 }
 0x22d   : > { %v2291_v42 = vpop.f32.mrf.mxu1 }
 0x22e   : > { %v2476_v50 = vmax.f32 %v2399_v16, 0.0  ;;  %v2292_v5 = vadd.f32 %v2291_v42, %v5338_v54  ;;  %v2404_v20 = vpop.f32.mrf.mxu0  ;;  %v2531_v12 = vpack.c.bf16 %v2475_v41, %v2471_v8  ;;  %v2403_v59 = vadd.f32 %v2402_v31, %v2290_v39 }
 0x22f   : > { %v2293_v25 = vpop.f32.mrf.mxu1 }
 0x230   : > { %v2532_v62 = vpack.c.bf16 %v2476_v50, %v2472_v17  ;;  %v2294_v3 = vadd.f32 %v2293_v25, %v5343_v38  ;;  %v2406_v43 = vpop.f32.mrf.mxu0  ;;  %v2405_v4 = vadd.f32 %v2404_v20, %v2292_v5  ;;  %v2479_v60 = vmax.f32 %v2403_v59, 0.0 }
 0x231   : > { %v2295_v27 = vpop.f32.mrf.mxu1 }
 0x232   : > { %v2407_v58 = vadd.f32 %v2406_v43, %v2294_v3  ;;  %v2296_v51 = vadd.f32 %v2295_v27, %v5338_v54  ;;  %v2408_v11 = vpop.f32.mrf.mxu0  ;;  %2957 = vmatprep.mubr.bf16.mxu0 %v2532_v62  ;;  %v2480_v63 = vmax.f32 %v2405_v4, 0.0 }
 0x233   : > { %v2299_v10 = vpop.f32.mrf.mxu1  ;;  %2958 = vmatmul.mubr.bf16.gmra.mxu0 %v2531_v12  ;;  %3238 = vmatmul.mubr.bf16.gmra.mxu1 %v5120_v9 }
 0x234   : > { %v2409_v49 = vadd.f32 %v2408_v11, %v2296_v51  ;;  %v2412_v26 = vpop.f32.mrf.mxu0  ;;  %3245 = vmatprep.mubr.bf16.mxu1 %v3051_v29  ;;  %v2483_v23 = vmax.f32 %v2407_v58, 0.0  ;;  %v2300_v46 = vadd.f32 %v2299_v10, %v5343_v38 }
 0x235   : > { %v2301_v13 = vpop.f32.mrf.mxu1 }
 0x236   : > { %v2484_v6 = vmax.f32 %v2409_v49, 0.0  ;;  %v2302_v56 = vadd.f32 %v2301_v13, %v5338_v54  ;;  %v2414_v61 = vpop.f32.mrf.mxu0  ;;  %v2535_v18 = vpack.c.bf16 %v2483_v23, %v2479_v60  ;;  %v2413_v16 = vadd.f32 %v2412_v26, %v2300_v46 }
 0x237   : > { %v2303_v28 = vpop.f32.mrf.mxu1 }
 0x238   : > { %v2536_v22 = vpack.c.bf16 %v2484_v6, %v2480_v63  ;;  %v2304_v45 = vadd.f32 %v2303_v28, %v5343_v38  ;;  %v2416_v9 = vpop.f32.mrf.mxu0  ;;  %v2415_v0 = vadd.f32 %v2414_v61, %v2302_v56  ;;  %v2487_v8 = vmax.f32 %v2413_v16, 0.0 }
 0x239   : > { %v2305_v7 = vpop.f32.mrf.mxu1 }
 0x23a   : > { %v2417_v55 = vadd.f32 %v2416_v9, %v2304_v45  ;;  %v2306_v33 = vadd.f32 %v2305_v7, %v5338_v54  ;;  %v2418_v30 = vpop.f32.mrf.mxu0  ;;  %2965 = vmatprep.mubr.bf16.mxu0 %v2536_v22  ;;  %v2488_v17 = vmax.f32 %v2415_v0, 0.0 }
 0x23b   : > { %v2309_v31 = vpop.f32.mrf.mxu1  ;;  %2966 = vmatmul.mubr.bf16.gmra.mxu0 %v2535_v18  ;;  %3246 = vmatmul.mubr.bf16.gmra.mxu1 %v5144_v48 }
 0x23c   : > { %v2419_v57 = vadd.f32 %v2418_v30, %v2306_v33  ;;  %v2422_v14 = vpop.f32.mrf.mxu0  ;;  %3253 = vmatprep.mubr.bf16.mxu1 %v3053_v15  ;;  %v2491_v41 = vmax.f32 %v2417_v55, 0.0  ;;  %v2310_v39 = vadd.f32 %v2309_v31, %v5343_v38 }
 0x23d   : > { %v2311_v42 = vpop.f32.mrf.mxu1 }
 0x23e   : > { %v2492_v50 = vmax.f32 %v2419_v57, 0.0  ;;  %v2312_v5 = vadd.f32 %v2311_v42, %v5338_v54  ;;  %v2424_v20 = vpop.f32.mrf.mxu0  ;;  %v2539_v44 = vpack.c.bf16 %v2491_v41, %v2487_v8  ;;  %v2423_v4 = vadd.f32 %v2422_v14, %v2310_v39 }
 0x23f   : > { %v2313_v25 = vpop.f32.mrf.mxu1 }
 0x240   : > { %v2540_v62 = vpack.c.bf16 %v2492_v50, %v2488_v17  ;;  %v2314_v3 = vadd.f32 %v2313_v25, %v5343_v38  ;;  %v2426_v43 = vpop.f32.mrf.mxu0  ;;  %v2425_v12 = vadd.f32 %v2424_v20, %v2312_v5  ;;  %v2495_v13 = vmax.f32 %v2423_v4, 0.0 }
 0x241   : > { %v2315_v48 = vpop.f32.mrf.mxu1  ;;  %v1089_v5 = vadd.f32 %v5287_v52, %v5170_v24 }
 0x242   : > { %v2427_v27 = vadd.f32 %v2426_v43, %v2314_v3  ;;  %v2316_v29 = vadd.f32 %v2315_v48, %v5338_v54  ;;  %v2428_v32 = vpop.f32.mrf.mxu0  ;;  %2973 = vmatprep.mubr.bf16.mxu0 %v2540_v62  ;;  %v2496_v49 = vmax.f32 %v2425_v12, 0.0 }
 0x243   : > { %v2319_v58 = vpop.f32.mrf.mxu1  ;;  %2974 = vmatmul.mubr.bf16.gmra.mxu0 %v2539_v44  ;;  %3254 = vmatmul.mubr.bf16.gmra.mxu1 %v5172_v21 }
 0x244   : > { %v2429_v51 = vadd.f32 %v2428_v32, %v2316_v29  ;;  %v2432_v11 = vpop.f32.mrf.mxu0  ;;  %3261 = vmatprep.mubr.bf16.mxu1 %v5197_v35  ;;  %v2499_v59 = vmax.f32 %v2427_v27, 0.0  ;;  %v2320_v19 = vadd.f32 %v2319_v58, %v5343_v38  ;;  %v1186_v27 = vmax.f32 %v1089_v5, 0.0 }
 0x245   : > { %v2321_v10 = vpop.f32.mrf.mxu1 }
 0x246   : > { %v2500_v26 = vmax.f32 %v2429_v51, 0.0  ;;  %v2322_v37 = vadd.f32 %v2321_v10, %v5338_v54  ;;  %v2434_v23 = vpop.f32.mrf.mxu0  ;;  %v2543_v21 = vpack.c.bf16 %v2499_v59, %v2495_v13  ;;  %v2433_v45 = vadd.f32 %v2432_v11, %v2320_v19 }
 0x247   : > { %v2323_v63 = vpop.f32.mrf.mxu1 }
 0x248   : > { %v2544_v6 = vpack.c.bf16 %v2500_v26, %v2496_v49  ;;  %v2324_v56 = vadd.f32 %v2323_v63, %v5343_v38  ;;  %v2436_v61 = vpop.f32.mrf.mxu0  ;;  %v2435_v46 = vadd.f32 %v2434_v23, %v2322_v37  ;;  %v2503_v31 = vmax.f32 %v2433_v45, 0.0 }
 0x249   : > { %v2325_v60 = vpop.f32.mrf.mxu1 }
 0x24a   : > { %v2437_v28 = vadd.f32 %v2436_v61, %v2324_v56  ;;  %v2326_v35 = vadd.f32 %v2325_v60, %v5338_v54  ;;  %v2438_v22 = vpop.f32.mrf.mxu0  ;;  %2981 = vmatprep.mubr.bf16.mxu0 %v2544_v6  ;;  %v2504_v33 = vmax.f32 %v2435_v46, 0.0 }
 0x24b   : > { %v2329_v9 = vpop.f32.mrf.mxu1  ;;  %2982 = vmatmul.mubr.bf16.gmra.mxu0 %v2543_v21  ;;  %3262 = vmatmul.mubr.bf16.gmra.mxu1 %v5194_v47  ;;  %v1085_v47 = vadd.f32 %v5221_v34, %v5170_v24 }
 0x24c   : > { %v2439_v18 = vadd.f32 %v2438_v22, %v2326_v35  ;;  %v2442_v7 = vpop.f32.mrf.mxu0  ;;  %3269 = vmatprep.mubr.bf16.mxu1 %v5209_v1  ;;  %v2507_v0 = vmax.f32 %v2437_v28, 0.0  ;;  %v2330_v57 = vadd.f32 %v2329_v9, %v5343_v38 }
 0x24d   : > { %v2331_v55 = vpop.f32.mrf.mxu1  ;;  %v1180_v34 = vmax.f32 %v1085_v47, 0.0 }
 0x24e   : > { %v2508_v30 = vmax.f32 %v2439_v18, 0.0  ;;  %v2332_v15 = vadd.f32 %v2331_v55, %v5338_v54  ;;  %v2444_v16 = vpop.f32.mrf.mxu0  ;;  %v2547_v50 = vpack.c.bf16 %v2507_v0, %v2503_v31  ;;  %v2443_v62 = vadd.f32 %v2442_v7, %v2330_v57 }
 0x24f   : > { %v2333_v14 = vpop.f32.mrf.mxu1 }
 0x250   : > { %v2548_v41 = vpack.c.bf16 %v2508_v30, %v2504_v33  ;;  %v2334_v42 = vadd.f32 %v2333_v14, %v5343_v38  ;;  %v2446_v17 = vpop.f32.mrf.mxu0  ;;  %v2445_v20 = vadd.f32 %v2444_v16, %v2332_v15  ;;  %v2511_v4 = vmax.f32 %v2443_v62, 0.0 }
 0x251   : > { %v2335_v1 = vpop.f32.mrf.mxu1 }
 0x252   : > { %v2447_v8 = vadd.f32 %v2446_v17, %v2334_v42  ;;  %v2336_v39 = vadd.f32 %v2335_v1, %v5338_v54  ;;  %v2448_v25 = vpop.f32.mrf.mxu0  ;;  %2989 = vmatprep.mubr.bf16.mxu0 %v2548_v41  ;;  %v2512_v24 = vmax.f32 %v2445_v20, 0.0 }
 0x253   : > { %v2339_v3 = vpop.f32.mrf.mxu1  ;;  %2990 = vmatmul.mubr.bf16.gmra.mxu0 %v2547_v50  ;;  %3270 = vmatmul.mubr.bf16.gmra.mxu1 %v5206_v53 }
 0x254   : > { %v2449_v43 = vadd.f32 %v2448_v25, %v2336_v39  ;;  %v2452_v44 = vpop.f32.mrf.mxu0  ;;  %3277 = vmatprep.mubr.bf16.mxu1 %v5223_v2  ;;  %v2515_v48 = vmax.f32 %v2447_v8, 0.0  ;;  %v2340_v58 = vadd.f32 %v2339_v3, %v5343_v38  ;;  %v3061_v2 = vpack.c.bf16 %v1186_v27, %v1180_v34 }
 0x255   : > { %v2341_v12 = vpop.f32.mrf.mxu1 }
 0x256   : > { %v2516_v52 = vmax.f32 %v2449_v43, 0.0  ;;  %v2342_v29 = vadd.f32 %v2341_v12, %v5338_v54  ;;  %v2454_v32 = vpop.f32.mrf.mxu0  ;;  %v2551_v10 = vpack.c.bf16 %v2515_v48, %v2511_v4  ;;  %v2453_v13 = vadd.f32 %v2452_v44, %v2340_v58 }
 0x257   : > { %v2343_v51 = vpop.f32.mrf.mxu1 }
 0x258   : > { %v2552_v11 = vpack.c.bf16 %v2516_v52, %v2512_v24  ;;  %v2344_v53 = vadd.f32 %v2343_v51, %v5343_v38  ;;  %v2456_v59 = vpop.f32.mrf.mxu0  ;;  %v2455_v26 = vadd.f32 %v2454_v32, %v2342_v29  ;;  %v2519_v38 = vmax.f32 %v2453_v13, 0.0 }
 0x259   : > { %v2345_v49 = vpop.f32.mrf.mxu1 }
 0x25a   : > { %v2457_v37 = vadd.f32 %v2456_v59, %v2344_v53  ;;  %v2346_v23 = vadd.f32 %v2345_v49, %v5338_v54  ;;  %2997 = vmatprep.mubr.bf16.mxu0 %v2552_v11  ;;  %v2458_v19 = vpop.f32.mrf.mxu0  ;;  %v2520_v56 = vmax.f32 %v2455_v26, 0.0 }
 0x25b   : > { %2998 = vmatmul.mubr.bf16.gmra.mxu0 %v2551_v10  ;;  %3278 = vmatmul.mubr.bf16.gmra.mxu1 %v5218_v40 }
 0x25c   : > { %v2459_v63 = vadd.f32 %v2458_v19, %v2346_v23  ;;  %3285 = vmatprep.mubr.bf16.mxu1 %v3061_v2  ;;  %v2523_v6 = vmax.f32 %v2457_v37, 0.0  ;;  %v5441_v2 = vld [vmem:[%s5643_s8] ss:$0 sm:$0xff] }
 0x25e   : > { %v2524_v61 = vmax.f32 %v2459_v63, 0.0  ;;  %v2555_v60 = vpack.c.bf16 %v2523_v6, %v2519_v38 }
 0x260   : > { %v2556_v21 = vpack.c.bf16 %v2524_v61, %v2520_v56 }
 0x262   : > { %3005 = vmatprep.mubr.bf16.mxu0 %v2556_v21 }
 0x263   : > { %3006 = vmatmul.mubr.bf16.gmra.mxu0 %v2555_v60  ;;  %3286 = vmatmul.mubr.bf16.gmra.mxu1 %v5236_v36 }
 0x2ab   : > { %v3873_v46 = vpop.f32.mrf.mxu1 }
 0x2ad   : > { %v3874_v54 = vpop.f32.mrf.mxu1 }
 0x2ae   : > { %v5404_v28 = vadd.f32 %v3874_v54, %v3873_v46 }
 0x2af   : > { %v3876_v35 = vpop.f32.mrf.mxu1 }
 0x2b1   : > { %v3877_v22 = vpop.f32.mrf.mxu1 }
 0x2b2   : > { %v5406_v45 = vadd.f32 %v3877_v22, %v3876_v35 }
 0x2b3   : > { %v3879_v40 = vpop.f32.mrf.mxu1 }
 0x2b5   : > { %v3880_v9 = vpop.f32.mrf.mxu1 }
 0x2b6   : > { %v5408_v18 = vadd.f32 %v3880_v9, %v3879_v40 }
 0x2b7   : > { %v3882_v7 = vpop.f32.mrf.mxu1 }
 0x2b9   : > { %v3883_v0 = vpop.f32.mrf.mxu1 }
 0x2ba   : > { %v5410_v55 = vadd.f32 %v3883_v0, %v3882_v7 }
 0x2bb   : > { %v3885_v33 = vpop.f32.mrf.mxu1 }
 0x2bd   : > { %v3886_v30 = vpop.f32.mrf.mxu1 }
 0x2be   : > { %v5412_v15 = vadd.f32 %v3886_v30, %v3885_v33 }
 0x2bf   : > { %v3888_v36 = vpop.f32.mrf.mxu1 }
 0x2c1   : > { %v3889_v16 = vpop.f32.mrf.mxu1 }
 0x2c2   : > { %v5414_v31 = vadd.f32 %v3889_v16, %v3888_v36 }
 0x2c3   : > { %v3891_v57 = vpop.f32.mrf.mxu1 }
 0x2c5   : > { %v3892_v14 = vpop.f32.mrf.mxu1 }
 0x2c6   : > { %v5416_v41 = vadd.f32 %v3892_v14, %v3891_v57 }
 0x2c7   : > { %v3894_v42 = vpop.f32.mrf.mxu1 }
 0x2c9   : > { %v3895_v17 = vpop.f32.mrf.mxu1 }
 0x2ca   : > { %v5418_v47 = vadd.f32 %v3895_v17, %v3894_v42 }
 0x2cb   : > { %v3897_v50 = vpop.f32.mrf.mxu1 }
 0x2cd   : > { %v3898_v1 = vpop.f32.mrf.mxu1 }
 0x2ce   : > { %v5420_v5 = vadd.f32 %v3898_v1, %v3897_v50 }
 0x2cf   : > { %v3900_v20 = vpop.f32.mrf.mxu1 }
 0x2d1   : > { %v3901_v8 = vpop.f32.mrf.mxu1 }
 0x2d2   : > { %v5422_v39 = vadd.f32 %v3901_v8, %v3900_v20 }
 0x2d3   : > { %v3903_v25 = vpop.f32.mrf.mxu1 }
 0x2d5   : > { %v3904_v62 = vpop.f32.mrf.mxu1 }
 0x2d6   : > { %v5424_v3 = vadd.f32 %v3904_v62, %v3903_v25 }
 0x2d7   : > { %v3906_v43 = vpop.f32.mrf.mxu1 }
 0x2d9   : > { %v3907_v44 = vpop.f32.mrf.mxu1 }
 0x2da   : > { %v5426_v34 = vadd.f32 %v3907_v44, %v3906_v43 }
 0x2db   : > { %v3909_v48 = vpop.f32.mrf.mxu1 }
 0x2dd   : > { %v3910_v12 = vpop.f32.mrf.mxu1 }
 0x2de   : > { %v5428_v27 = vadd.f32 %v3910_v12, %v3909_v48 }
 0x2df   : > { %v3912_v24 = vpop.f32.mrf.mxu1 }
 0x2e1   : > { %v3913_v52 = vpop.f32.mrf.mxu1 }
 0x2e2   : > { %v5430_v29 = vadd.f32 %v3913_v52, %v3912_v24 }
 0x2e3   : > { %v3915_v32 = vpop.f32.mrf.mxu1 }
 0x2e5   : > { %v3916_v4 = vpop.f32.mrf.mxu1 }
 0x2e6   : > { %v5432_v58 = vadd.f32 %v3916_v4, %v3915_v32 }
 0x2e7   : > { %v3918_v51 = vpop.f32.mrf.mxu1 }
 0x2e9   : > { %v3919_v11 = vpop.f32.mrf.mxu1 }
 0x2ea   : > { %v5434_v53 = vadd.f32 %v3919_v11, %v3918_v51 }
 0x2eb   : > { %v5436_v59 = vpop.f32.mrf.mxu0  ;;  %v4001_v10 = vpop.f32.mrf.mxu1 }
 0x2ed   : > { %v3938_v49 = vpop.f32.mrf.mxu0  ;;  %v4002_v26 = vpop.f32.mrf.mxu1 }
 0x2ee   : > { %v4003_v37 = vadd.f32 %v4002_v26, %v4001_v10 }
 0x2ef   : > { %v5443_v23 = vpop.f32.mrf.mxu0  ;;  %v4004_v13 = vpop.f32.mrf.mxu1 }
 0x2f0   : > { %v3232_v19 = vadd.f32 %v4003_v37, %v5441_v2 }
 0x2f1   : > { %v5446_v63 = vpop.f32.mrf.mxu0  ;;  %v4005_v6 = vpop.f32.mrf.mxu1 }
 0x2f2   : > { %v3839_v56 = vmul.f32 -1.442695, %v3232_v19  ;;  %v4006_v61 = vadd.f32 %v4005_v6, %v4004_v13 }
 0x2f3   : > { %v5448_v38 = vpop.f32.mrf.mxu0  ;;  %v4007_v21 = vpop.f32.mrf.mxu1 }
 0x2f4   : > { %4395 = vpow2.f32 %v3839_v56  ;;  %v3235_v60 = vadd.f32 %v4006_v61, %v5441_v2  ;;  %v5478_v56 = vld [vmem:[%s5641_s6] ss:$0 sm:$0xff] }
 0x2f5   : > { %v5451_v46 = vpop.f32.mrf.mxu0  ;;  %v4008_v54 = vpop.f32.mrf.mxu1 }
 0x2f6   : > { %v3840_v35 = vmul.f32 -1.442695, %v3235_v60  ;;  %v4009_v22 = vadd.f32 %v4008_v54, %v4007_v21  ;;  %v3939_v60 = vadd.f32 %v3938_v49, %v5436_v59 }
 0x2f7   : > { %v5453_v40 = vpop.f32.mrf.mxu0  ;;  %v4010_v9 = vpop.f32.mrf.mxu1 }
 0x2f8   : > { %4397 = vpow2.f32 %v3840_v35  ;;  %v3240_v7 = vadd.f32 %v4009_v22, %v5441_v2 }
 0x2f9   : > { %v5456_v0 = vpop.f32.mrf.mxu0  ;;  %v4011_v33 = vpop.f32.mrf.mxu1 }
 0x2fa   : > { %v3841_v30 = vmul.f32 -1.442695, %v3240_v7  ;;  %v4012_v36 = vadd.f32 %v4011_v33, %v4010_v9  ;;  %v2855_v7 = vadd.f32 %v5404_v28, %v5478_v56  ;;  %v3942_v28 = vadd.f32 %v5446_v63, %v5443_v23  ;;  %v4460_v63 = vld [vmem:[%s4753_s20 + $0x8] sm:$0xff] }
 0x2fb   : > { %v5458_v16 = vpop.f32.mrf.mxu0  ;;  %v4013_v57 = vpop.f32.mrf.mxu1 }
 0x2fc   : > { %4399 = vpow2.f32 %v3841_v30  ;;  %v3243_v14 = vadd.f32 %v4012_v36, %v5441_v2 }
 0x2fd   : > { %v5461_v42 = vpop.f32.mrf.mxu0  ;;  %v4014_v17 = vpop.f32.mrf.mxu1 }
 0x2fe   : > { %v3842_v50 = vmul.f32 -1.442695, %v3243_v14  ;;  %v4015_v1 = vadd.f32 %v4014_v17, %v4013_v57  ;;  %v2952_v14 = vadd.f32 %v3939_v60, %v2855_v7  ;;  %v4459_v17 = vld [vmem:[%s4753_s20] sm:$0xff] }
 0x2ff   : > { %v5463_v20 = vpop.f32.mrf.mxu0  ;;  %v4016_v8 = vpop.f32.mrf.mxu1 }
 0x300   : > { %4401 = vpow2.f32 %v3842_v50  ;;  %v3248_v25 = vadd.f32 %v4015_v1, %v5441_v2  ;;  %v3014_v50 = vmul.f32 0.1, %v4459_v17 }
 0x301   : > { %v4396_v62 = vpop.eup %4395  ;;  %v5466_v43 = vpop.f32.mrf.mxu0 }
 0x302   : > { %v4017_v44 = vpop.f32.mrf.mxu1  ;;  %v3342_v48 = vadd.f32 1.0, %v4396_v62  ;;  %v3843_v12 = vmul.f32 -1.442695, %v3248_v25  ;;  %v3030_v23 = vadd.f32 %v3014_v50, %v2952_v14 }
 0x303   : > { %v4018_v24 = vadd.f32 %v4017_v44, %v4016_v8  ;;  %v5468_v52 = vpop.f32.mrf.mxu0 }
 0x304   : > { %v4019_v32 = vpop.f32.mrf.mxu1  ;;  %4403 = vrcp.f32 %v3342_v48 }
 0x305   : > { %v4398_v4 = vpop.eup %4397  ;;  %4405 = vpow2.f32 %v3843_v12  ;;  %v3251_v51 = vadd.f32 %v4018_v24, %v5441_v2  ;;  %v5471_v11 = vpop.f32.mrf.mxu0  ;;  %v2858_v12 = vadd.f32 %v5406_v45, %v5478_v56 }
 0x306   : > { %v4020_v10 = vpop.f32.mrf.mxu1  ;;  %v3343_v26 = vadd.f32 1.0, %v4398_v4  ;;  %v3015_v4 = vmul.f32 0.1, %v4460_v63 }
 0x307   : > { %v4021_v37 = vadd.f32 %v4020_v10, %v4019_v32  ;;  %v3844_v13 = vmul.f32 -1.442695, %v3251_v51  ;;  %v5473_v19 = vpop.f32.mrf.mxu0 }
 0x308   : > { %v4022_v6 = vpop.f32.mrf.mxu1  ;;  %4407 = vrcp.f32 %v3343_v26 }
 0x309   : > { %v3256_v61 = vadd.f32 %v4021_v37, %v5441_v2  ;;  %v4400_v21 = vpop.eup %4399  ;;  %4409 = vpow2.f32 %v3844_v13  ;;  %v5482_v54 = vpop.f32.mrf.mxu0  ;;  %v2955_v37 = vadd.f32 %v3942_v28, %v2858_v12  ;;  %v3945_v13 = vadd.f32 %v5451_v46, %v5448_v38  ;;  %v4461_v38 = vld [vmem:[%s4753_s20 + $0x10] sm:$0xff] }
 0x30a   : > { %v4023_v35 = vpop.f32.mrf.mxu1  ;;  %v3344_v22 = vadd.f32 1.0, %v4400_v21  ;;  %v3016_v46 = vmul.f32 0.1, %v4461_v38 }
 0x30b   : > { %v3845_v9 = vmul.f32 -1.442695, %v3256_v61  ;;  %v4024_v33 = vadd.f32 %v4023_v35, %v4022_v6  ;;  %v5486_v30 = vpop.f32.mrf.mxu0  ;;  %v2863_v35 = vadd.f32 %v5408_v18, %v5478_v56 }
 0x30c   : > { %v4025_v36 = vpop.f32.mrf.mxu1  ;;  %4411 = vrcp.f32 %v3344_v22 }
 0x30d   : > { %v4402_v57 = vpop.eup %4401  ;;  %4413 = vpow2.f32 %v3845_v9  ;;  %v3259_v59 = vadd.f32 %v4024_v33, %v5441_v2  ;;  %v5490_v49 = vpop.f32.mrf.mxu0  ;;  %v3948_v33 = vadd.f32 %v5456_v0, %v5453_v40 }
 0x30e   : > { %v4026_v1 = vpop.f32.mrf.mxu1  ;;  %v3345_v8 = vadd.f32 1.0, %v4402_v57 }
 0x30f   : > { %v4027_v25 = vadd.f32 %v4026_v1, %v4025_v36  ;;  %v3846_v62 = vmul.f32 -1.442695, %v3259_v59  ;;  %v5500_v44 = vpop.f32.mrf.mxu0  ;;  %v2960_v59 = vadd.f32 %v3945_v13, %v2863_v35  ;;  %v2866_v1 = vadd.f32 %v5410_v55, %v5478_v56 }
 0x310   : > { %v4028_v48 = vpop.f32.mrf.mxu1  ;;  %4415 = vrcp.f32 %v3345_v8  ;;  %v3951_v13 = vadd.f32 %v5461_v42, %v5458_v16 }
 0x311   : > { %v3264_v24 = vadd.f32 %v4027_v25, %v5441_v2  ;;  %v4404_v32 = vpop.eup %4403  ;;  %4417 = vpow2.f32 %v3846_v62  ;;  %v5509_v61 = vpop.f32.mrf.mxu0 }
 0x312   : > { %v4029_v51 = vpop.f32.mrf.mxu1  ;;  %v4406_v10 = vpop.eup %4405  ;;  %v3390_v26 = vsub.f32 1.0, %v4404_v32  ;;  %3470 = vst [vmem:[%s5498_s16] sm:$0xff] %v4404_v32  ;;  %v3422_v9 = vmul.f32 %v4404_v32, %v3030_v23  ;;  %v4462_v32 = vld [vmem:[%s4753_s20 + $0x18] sm:$0xff] }
 0x313   : > { %v3847_v6 = vmul.f32 -1.442695, %v3264_v24  ;;  %v3346_v45 = vadd.f32 1.0, %v4406_v10  ;;  %v4030_v21 = vadd.f32 %v4029_v51, %v4028_v48  ;;  %v5526_v25 = vpop.f32.mrf.mxu0  ;;  %v2963_v24 = vadd.f32 %v3948_v33, %v2866_v1 }
 0x314   : > { %v4031_v60 = vpop.f32.mrf.mxu1  ;;  %v3406_v22 = vmul.f32 %v4459_v17, %v3390_v26  ;;  %v3031_v17 = vadd.f32 %v3015_v4, %v2955_v37  ;;  %v3017_v23 = vmul.f32 0.1, %v4462_v32  ;;  %v3032_v26 = vadd.f32 %v3016_v46, %v2960_v59 }
 0x315   : > { %4419 = vpow2.f32 %v3847_v6  ;;  %v4408_v7 = vpop.eup %4407  ;;  %v3267_v36 = vadd.f32 %v4030_v21, %v5441_v2  ;;  %v5534_v6 = vpop.f32.mrf.mxu0  ;;  %v2874_v1 = vadd.f32 %v5414_v31, %v5478_v56 }
 0x316   : > { %4421 = vrcp.f32 %v3346_v45  ;;  %v4032_v18 = vpop.f32.mrf.mxu1  ;;  %v4410_v57 = vpop.eup %4409  ;;  %v3438_v14 = vadd.f32 %v3422_v9, %v3406_v22  ;;  %v3391_v50 = vsub.f32 1.0, %v4408_v7  ;;  %3471 = vst [vmem:[%s5498_s16 + $0x8] sm:$0xff] %v4408_v7  ;;  %v3423_v48 = vmul.f32 %v4408_v7, %v3031_v17 }
 0x317   : > { %v3347_v28 = vadd.f32 1.0, %v4410_v57  ;;  %v3848_v8 = vmul.f32 -1.442695, %v3267_v36  ;;  %v4033_v40 = vadd.f32 %v4032_v18, %v4031_v60  ;;  %v2871_v7 = vadd.f32 %v5412_v15, %v5478_v56  ;;  %v4463_v57 = vld [vmem:[%s4753_s20 + $0x20] sm:$0xff] }
 0x318   : > { %v4034_v0 = vpop.f32.mrf.mxu1  ;;  %3454 = vst [vmem:[%s5517_s17] sm:$0xff] %v3438_v14  ;;  %v3407_v62 = vmul.f32 %v4460_v63, %v3391_v50  ;;  %v3033_v46 = vadd.f32 %v3017_v23, %v2963_v24  ;;  %v3954_v18 = vadd.f32 %v5466_v43, %v5463_v20  ;;  %v3018_v14 = vmul.f32 0.1, %v4463_v57  ;;  %v5543_v50 = vpop.f32.mrf.mxu0  ;;  %v4464_v20 = vld [vmem:[%s4753_s20 + $0x28] sm:$0xff] }
 0x319   : > { %v4412_v12 = vpop.eup %4411  ;;  %4423 = vrcp.f32 %v3347_v28  ;;  %v3272_v4 = vadd.f32 %v4033_v40, %v5441_v2  ;;  %v3019_v43 = vmul.f32 0.1, %v4464_v20 }
 0x31a   : > { %v4035_v51 = vpop.f32.mrf.mxu1  ;;  %v4414_v55 = vpop.eup %4413  ;;  %v3439_v10 = vadd.f32 %v3423_v48, %v3407_v62  ;;  %v3392_v37 = vsub.f32 1.0, %v4412_v12  ;;  %3472 = vst [vmem:[%s5498_s16 + $0x10] sm:$0xff] %v4412_v12  ;;  %4425 = vpow2.f32 %v3848_v8  ;;  %v3424_v35 = vmul.f32 %v4412_v12, %v3032_v26 }
 0x31b   : > { %v3348_v63 = vadd.f32 1.0, %v4414_v55  ;;  %v3849_v45 = vmul.f32 -1.442695, %v3272_v4  ;;  %v4036_v22 = vadd.f32 %v4035_v51, %v4034_v0  ;;  %v2971_v23 = vadd.f32 %v3954_v18, %v2874_v1 }
 0x31c   : > { %v4037_v21 = vpop.f32.mrf.mxu1  ;;  %3455 = vst [vmem:[%s5517_s17 + $0x8] sm:$0xff] %v3439_v10  ;;  %v3408_v60 = vmul.f32 %v4461_v38, %v3392_v37  ;;  %v2968_v38 = vadd.f32 %v3951_v13, %v2871_v7  ;;  %v5554_v10 = vpop.f32.mrf.mxu0 }
 0x31d   : > { %v4416_v9 = vpop.eup %4415  ;;  %4427 = vrcp.f32 %v3348_v63  ;;  %v3275_v15 = vadd.f32 %v4036_v22, %v5441_v2  ;;  %v2879_v63 = vadd.f32 %v5416_v41, %v5478_v56 }
 0x31e   : > { %v4038_v33 = vpop.f32.mrf.mxu1  ;;  %v4418_v16 = vpop.eup %4417  ;;  %v3440_v42 = vadd.f32 %v3424_v35, %v3408_v60  ;;  %v3393_v36 = vsub.f32 1.0, %v4416_v9  ;;  %3473 = vst [vmem:[%s5498_s16 + $0x18] sm:$0xff] %v4416_v9  ;;  %4429 = vpow2.f32 %v3849_v45  ;;  %v3425_v8 = vmul.f32 %v4416_v9, %v3033_v46  ;;  %v4465_v60 = vld [vmem:[%s4753_s20 + $0x30] sm:$0xff] }
 0x31f   : > { %v3349_v17 = vadd.f32 1.0, %v4418_v16  ;;  %v4039_v40 = vadd.f32 %v4038_v33, %v4037_v21  ;;  %v3850_v62 = vmul.f32 -1.442695, %v3275_v15  ;;  %v3034_v31 = vadd.f32 %v3018_v14, %v2968_v38 }
 0x320   : > { %v4040_v59 = vpop.f32.mrf.mxu1  ;;  %3456 = vst [vmem:[%s5517_s17 + $0x10] sm:$0xff] %v3440_v42  ;;  %v3409_v28 = vmul.f32 %v4462_v32, %v3393_v36  ;;  %v3957_v32 = vadd.f32 %v5471_v11, %v5468_v52  ;;  %v3020_v35 = vmul.f32 0.1, %v4465_v60  ;;  %v3035_v52 = vadd.f32 %v3019_v43, %v2971_v23  ;;  %v5564_v42 = vpop.f32.mrf.mxu0 }
 0x321   : > { %4431 = vrcp.f32 %v3349_v17  ;;  %v3280_v51 = vadd.f32 %v4039_v40, %v5441_v2  ;;  %v3960_v11 = vadd.f32 %v5482_v54, %v5473_v19  ;;  %v2882_v38 = vadd.f32 %v5418_v47, %v5478_v56  ;;  %v4466_v17 = vld [vmem:[%s4753_s20 + $0x38] sm:$0xff] }
 0x322   : > { %v4420_v0 = vpop.eup %4419  ;;  %v4041_v48 = vpop.f32.mrf.mxu1  ;;  %v3441_v24 = vadd.f32 %v3425_v8, %v3409_v28  ;;  %4433 = vpow2.f32 %v3850_v62  ;;  %v2976_v41 = vadd.f32 %v3957_v32, %v2879_v63  ;;  %v3021_v15 = vmul.f32 0.1, %v4466_v17 }
 0x323   : > { %v4422_v12 = vpop.eup %4421  ;;  %v3350_v4 = vadd.f32 1.0, %v4420_v0  ;;  %v3851_v37 = vmul.f32 -1.442695, %v3280_v51  ;;  %v4042_v13 = vadd.f32 %v4041_v48, %v4040_v59  ;;  %v2979_v8 = vadd.f32 %v3960_v11, %v2882_v38  ;;  %v4467_v51 = vld [vmem:[%s4753_s20 + $0x40] sm:$0xff] }
 0x324   : > { %v3394_v55 = vsub.f32 1.0, %v4422_v12  ;;  %3474 = vst [vmem:[%s5498_s16 + $0x20] sm:$0xff] %v4422_v12  ;;  %v4043_v26 = vpop.f32.mrf.mxu1  ;;  %3457 = vst [vmem:[%s5517_s17 + $0x18] sm:$0xff] %v3441_v24  ;;  %v3426_v21 = vmul.f32 %v4422_v12, %v3034_v31  ;;  %v3963_v40 = vadd.f32 %v5490_v49, %v5486_v30  ;;  %v3036_v62 = vadd.f32 %v3020_v35, %v2976_v41 }
 0x325   : > { %4435 = vrcp.f32 %v3350_v4  ;;  %v3283_v7 = vadd.f32 %v4042_v13, %v5441_v2  ;;  %v2887_v12 = vadd.f32 %v5420_v5, %v5478_v56  ;;  %v3022_v31 = vmul.f32 0.1, %v4467_v51 }
 0x326   : > { %v3410_v45 = vmul.f32 %v4463_v57, %v3394_v55  ;;  %v4044_v22 = vpop.f32.mrf.mxu1  ;;  %v4424_v9 = vpop.eup %4423  ;;  %4437 = vpow2.f32 %v3851_v37  ;;  %v3037_v32 = vadd.f32 %v3021_v15, %v2979_v8  ;;  %v3966_v5 = vadd.f32 %v5509_v61, %v5500_v44 }
 0x327   : > { %v4426_v46 = vpop.eup %4425  ;;  %v3395_v16 = vsub.f32 1.0, %v4424_v9  ;;  %3475 = vst [vmem:[%s5498_s16 + $0x28] sm:$0xff] %v4424_v9  ;;  %v4045_v36 = vadd.f32 %v4044_v22, %v4043_v26  ;;  %v3852_v14 = vmul.f32 -1.442695, %v3283_v7  ;;  %v3427_v54 = vmul.f32 %v4424_v9, %v3035_v52 }
 0x328   : > { %v3442_v33 = vadd.f32 %v3426_v21, %v3410_v45  ;;  %v4046_v18 = vpop.f32.mrf.mxu1  ;;  %v3351_v57 = vadd.f32 1.0, %v4426_v46  ;;  %v2984_v26 = vadd.f32 %v3963_v40, %v2887_v12  ;;  %v4468_v46 = vld [vmem:[%s4753_s20 + $0x48] sm:$0xff]  ;;  %v2895_v38 = vadd.f32 %v5424_v3, %v5478_v56 }
 0x329   : > { %v3411_v19 = vmul.f32 %v4464_v20, %v3395_v16  ;;  %v3288_v59 = vadd.f32 %v4045_v36, %v5441_v2  ;;  %v5574_v20 = vpop.f32.mrf.mxu0  ;;  %v3969_v36 = vadd.f32 %v5534_v6, %v5526_v25  ;;  %v3972_v25 = vadd.f32 %v5554_v10, %v5543_v50 }
 0x32a   : > { %3458 = vst [vmem:[%s5517_s17 + $0x20] sm:$0xff] %v3442_v33  ;;  %v4047_v1 = vpop.f32.mrf.mxu1  ;;  %v4428_v28 = vpop.eup %4427  ;;  %4439 = vrcp.f32 %v3351_v57  ;;  %v3038_v52 = vadd.f32 %v3022_v31, %v2984_v26  ;;  %v3023_v33 = vmul.f32 0.1, %v4468_v46 }
 0x32b   : > { %v4048_v47 = vadd.f32 %v4047_v1, %v4046_v18  ;;  %v4430_v0 = vpop.eup %4429  ;;  %v3443_v43 = vadd.f32 %v3427_v54, %v3411_v19  ;;  %v3396_v48 = vsub.f32 1.0, %v4428_v28  ;;  %3476 = vst [vmem:[%s5498_s16 + $0x30] sm:$0xff] %v4428_v28  ;;  %4441 = vpow2.f32 %v3852_v14  ;;  %v5584_v45 = vpop.f32.mrf.mxu0  ;;  %v4469_v1 = vld [vmem:[%s4753_s20 + $0x50] sm:$0xff] }
 0x32c   : > { %v3352_v24 = vadd.f32 1.0, %v4430_v0  ;;  %v3853_v23 = vmul.f32 -1.442695, %v3288_v59  ;;  %v3428_v49 = vmul.f32 %v4428_v28, %v3036_v62  ;;  %v2992_v59 = vadd.f32 %v3969_v36, %v2895_v38 }
 0x32d   : > { %v3291_v4 = vadd.f32 %v4048_v47, %v5441_v2  ;;  %3459 = vst [vmem:[%s5517_s17 + $0x28] sm:$0xff] %v3443_v43  ;;  %v3412_v30 = vmul.f32 %v4465_v60, %v3396_v48  ;;  %v2890_v60 = vadd.f32 %v5422_v39, %v5478_v56  ;;  %v3977_v16 = vpop.f32.mrf.mxu0  ;;  %v3024_v28 = vmul.f32 0.1, %v4469_v1 }
 0x32e   : > { %v4432_v55 = vpop.eup %4431  ;;  %4443 = vrcp.f32 %v3352_v24  ;;  %v2898_v47 = vadd.f32 %v5426_v34, %v5478_v56  ;;  %v3975_v24 = vadd.f32 %v5574_v20, %v5564_v42  ;;  %v2903_v34 = vadd.f32 %v5428_v27, %v5478_v56  ;;  %v4471_v20 = vld [vmem:[%s4753_s20 + $0x60] sm:$0xff] }
 0x32f   : > { %v3854_v37 = vmul.f32 -1.442695, %v3291_v4  ;;  %v3444_v13 = vadd.f32 %v3428_v49, %v3412_v30  ;;  %v3397_v63 = vsub.f32 1.0, %v4432_v55  ;;  %3477 = vst [vmem:[%s5498_s16 + $0x38] sm:$0xff] %v4432_v55  ;;  %4445 = vpow2.f32 %v3853_v23  ;;  %v4434_v2 = vpop.eup %4433  ;;  %v3979_v19 = vpop.f32.mrf.mxu0  ;;  %v4470_v23 = vld [vmem:[%s4753_s20 + $0x58] sm:$0xff] }
 0x330   : > { %v3429_v22 = vmul.f32 %v4432_v55, %v3037_v32  ;;  %v3353_v9 = vadd.f32 1.0, %v4434_v2  ;;  %v2987_v61 = vadd.f32 %v3966_v5, %v2890_v60  ;;  %v3040_v48 = vadd.f32 %v3024_v28, %v2992_v59 }
 0x331   : > { %4447 = vpow2.f32 %v3854_v37  ;;  %3460 = vst [vmem:[%s5517_s17 + $0x30] sm:$0xff] %v3444_v13  ;;  %v3413_v35 = vmul.f32 %v4466_v17, %v3397_v63  ;;  %v3980_v0 = vpop.f32.mrf.mxu0  ;;  %v2995_v10 = vadd.f32 %v3972_v25, %v2898_v47  ;;  %v3025_v4 = vmul.f32 0.1, %v4470_v23 }
 0x332   : > { %v4436_v21 = vpop.eup %4435  ;;  %4449 = vrcp.f32 %v3353_v9  ;;  %v3039_v17 = vadd.f32 %v3023_v33, %v2987_v61  ;;  %v3000_v42 = vadd.f32 %v3975_v24, %v2903_v34  ;;  %v3026_v37 = vmul.f32 0.1, %v4471_v20 }
 0x333   : > { %v3398_v11 = vsub.f32 1.0, %v4436_v21  ;;  %3478 = vst [vmem:[%s5498_s16 + $0x40] sm:$0xff] %v4436_v21  ;;  %v4438_v7 = vpop.eup %4437  ;;  %v3445_v44 = vadd.f32 %v3429_v22, %v3413_v35  ;;  %v3430_v39 = vmul.f32 %v4436_v21, %v3038_v52  ;;  %v3982_v55 = vpop.f32.mrf.mxu0  ;;  %v3041_v13 = vadd.f32 %v3025_v4, %v2995_v10 }
 0x334   : > { %v3354_v18 = vadd.f32 1.0, %v4438_v7  ;;  %v3978_v27 = vadd.f32 %v3977_v16, %v5584_v45  ;;  %v2906_v2 = vadd.f32 %v5430_v29, %v5478_v56  ;;  %v3042_v22 = vadd.f32 %v3026_v37, %v3000_v42  ;;  %v4472_v7 = vld [vmem:[%s4753_s20 + $0x68] sm:$0xff] }
 0x335   : > { %v3414_v41 = vmul.f32 %v4467_v51, %v3398_v11  ;;  %3461 = vst [vmem:[%s5517_s17 + $0x38] sm:$0xff] %v3445_v44  ;;  %v3983_v35 = vpop.f32.mrf.mxu0  ;;  %v3027_v44 = vmul.f32 0.1, %v4472_v7  ;;  %v3981_v45 = vadd.f32 %v3980_v0, %v3979_v19  ;;  %v2911_v29 = vadd.f32 %v5432_v58, %v5478_v56 }
 0x336   : > { %4451 = vrcp.f32 %v3354_v18  ;;  %v3003_v11 = vadd.f32 %v3978_v27, %v2906_v2  ;;  %v3984_v33 = vadd.f32 %v3983_v35, %v3982_v55 }
 0x337   : > { %v3446_v57 = vadd.f32 %v3430_v39, %v3414_v41  ;;  %v4440_v14 = vpop.eup %4439  ;;  %v2914_v41 = vadd.f32 %v5434_v53, %v5478_v56  ;;  %v3008_v38 = vadd.f32 %v3981_v45, %v2911_v29 }
 0x338   : > { %v4442_v54 = vpop.eup %4441  ;;  %v3399_v15 = vsub.f32 1.0, %v4440_v14  ;;  %3479 = vst [vmem:[%s5498_s16 + $0x48] sm:$0xff] %v4440_v14  ;;  %v3431_v3 = vmul.f32 %v4440_v14, %v3039_v17  ;;  %v3043_v36 = vadd.f32 %v3027_v44, %v3003_v11 }
 0x339   : > { %3462 = vst [vmem:[%s5517_s17 + $0x40] sm:$0xff] %v3446_v57  ;;  %v3355_v6 = vadd.f32 1.0, %v4442_v54  ;;  %v4473_v57 = vld [vmem:[%s4753_s20 + $0x70] sm:$0xff]  ;;  %v3011_v19 = vadd.f32 %v3984_v33, %v2914_v41  ;;  %v4474_v54 = vld [vmem:[%s4753_s20 + $0x78] sm:$0xff] }
 0x33a   : > { %v3415_v8 = vmul.f32 %v4468_v46, %v3399_v15  ;;  %v3028_v14 = vmul.f32 0.1, %v4473_v57  ;;  %v3029_v17 = vmul.f32 0.1, %v4474_v54 }
 0x33b   : > { %v4444_v40 = vpop.eup %4443  ;;  %4453 = vrcp.f32 %v3355_v6 }
 0x33c   : > { %v4446_v43 = vpop.eup %4445  ;;  %v3447_v62 = vadd.f32 %v3431_v3, %v3415_v8  ;;  %v3400_v12 = vsub.f32 1.0, %v4444_v40  ;;  %3480 = vst [vmem:[%s5498_s16 + $0x50] sm:$0xff] %v4444_v40  ;;  %v3432_v51 = vmul.f32 %v4444_v40, %v3040_v48  ;;  %v3044_v56 = vadd.f32 %v3028_v14, %v3008_v38 }
 0x33d   : > { %v3356_v30 = vadd.f32 1.0, %v4446_v43  ;;  %v3045_v25 = vadd.f32 %v3029_v17, %v3011_v19 }
 0x33e   : > { %v4448_v50 = vpop.eup %4447  ;;  %3463 = vst [vmem:[%s5517_s17 + $0x48] sm:$0xff] %v3447_v62  ;;  %v3416_v49 = vmul.f32 %v4469_v1, %v3400_v12 }
 0x33f   : > { %v3357_v31 = vadd.f32 1.0, %v4448_v50  ;;  %4455 = vrcp.f32 %v3356_v30  ;;  %v4450_v32 = vpop.eup %4449 }
 0x340   : > { %v3448_v26 = vadd.f32 %v3432_v51, %v3416_v49  ;;  %v3401_v63 = vsub.f32 1.0, %v4450_v32  ;;  %3481 = vst [vmem:[%s5498_s16 + $0x58] sm:$0xff] %v4450_v32  ;;  %v3433_v60 = vmul.f32 %v4450_v32, %v3041_v13 }
 0x341   : > { %4457 = vrcp.f32 %v3357_v31 }
 0x342   : > { %3464 = vst [vmem:[%s5517_s17 + $0x50] sm:$0xff] %v3448_v26  ;;  %v3417_v21 = vmul.f32 %v4470_v23, %v3401_v63 }
 0x343   : > { %v4452_v5 = vpop.eup %4451 }
 0x344   : > { %v3402_v9 = vsub.f32 1.0, %v4452_v5  ;;  %3482 = vst [vmem:[%s5498_s16 + $0x60] sm:$0xff] %v4452_v5  ;;  %v3449_v52 = vadd.f32 %v3433_v60, %v3417_v21  ;;  %v3434_v46 = vmul.f32 %v4452_v5, %v3042_v22 }
 0x346   : > { %v3418_v61 = vmul.f32 %v4471_v20, %v3402_v9  ;;  %3465 = vst [vmem:[%s5517_s17 + $0x58] sm:$0xff] %v3449_v52 }
 0x348   : > { %v4454_v16 = vpop.eup %4453  ;;  %v3450_v39 = vadd.f32 %v3434_v46, %v3418_v61 }
 0x349   : > { %v3403_v18 = vsub.f32 1.0, %v4454_v16  ;;  %3483 = vst [vmem:[%s5498_s16 + $0x68] sm:$0xff] %v4454_v16  ;;  %v3435_v15 = vmul.f32 %v4454_v16, %v3043_v36 }
 0x34a   : > { %3466 = vst [vmem:[%s5517_s17 + $0x60] sm:$0xff] %v3450_v39 }
 0x34b   : > { %v3419_v58 = vmul.f32 %v4472_v7, %v3403_v18 }
 0x34c   : > { %v4456_v59 = vpop.eup %4455 }
 0x34d   : > { %v3451_v53 = vadd.f32 %v3435_v15, %v3419_v58  ;;  %v3404_v28 = vsub.f32 1.0, %v4456_v59  ;;  %3484 = vst [vmem:[%s5498_s16 + $0x70] sm:$0xff] %v4456_v59  ;;  %v3436_v3 = vmul.f32 %v4456_v59, %v3044_v56 }
 0x34e   : > { %v4458_v1 = vpop.eup %4457 }
 0x34f   : > { %v3405_v6 = vsub.f32 1.0, %v4458_v1  ;;  %3485 = vst [vmem:[%s5498_s16 + $0x78] sm:$0xff] %v4458_v1  ;;  %3467 = vst [vmem:[%s5517_s17 + $0x68] sm:$0xff] %v3451_v53  ;;  %v3420_v8 = vmul.f32 %v4473_v57, %v3404_v28  ;;  %v3437_v47 = vmul.f32 %v4458_v1, %v3045_v25 }
 0x351   : > { %v3421_v40 = vmul.f32 %v4474_v54, %v3405_v6  ;;  %v3452_v0 = vadd.f32 %v3436_v3, %v3420_v8 }
 0x353   : > { %v3453_v43 = vadd.f32 %v3437_v47, %v3421_v40  ;;  %3468 = vst [vmem:[%s5517_s17 + $0x70] sm:$0xff] %v3452_v0 }
 0x355   : > { %3469 = vst [vmem:[%s5517_s17 + $0x78] sm:$0xff] %v3453_v43 }
 0x356 PF: > { %s23_s13 = sadd.s32 1, %s4541_s13  }
 0x357   : > { %p20_p3 = scmp.ge.s32.totalorder %s23_s13, 4  }
 0x359   :  { %22 = sbr.rel (!%p20_p3) target bundleno = 2 (0x2), region = 107 }
 0x35e   :  { %3525 = vsyncpa [#allocation3], 1 }
 0x35f   :  { %3527 = vsyncpa [#allocation3 + $0x1], 1 }
 0x360   :  { %3528 = vsyncpa [#allocation5], 1 }

</bundles_post_ra>
